<compile_context>
chip_gen: v5e
topology: v5e:2x2
jax: 0.10.0
libtpu: 0.0.40
codegen_flags: <defaults>
</compile_context>

<pallas_src>
import jax
import jax.numpy as jnp
from jax.experimental import pallas as pl
from jax.experimental.pallas import tpu as pltpu


# ---------------------------------------------------------------------------
# Packed small-parameter layout: one f32 (96, 128) buffer, 8-row aligned slots.
# Columns beyond each parameter's width are zero (exploited for the lane-dense
# va_regressor output: zero weight columns -> zero output columns).
# ---------------------------------------------------------------------------
_B0_ROW = 0      # b0 : row 0,        cols 0:64
_W1_ROW = 8      # w1 : rows 8:72,    cols 0:8    (64 x 8)
_B1_ROW = 72     # b1 : row 72,       cols 0:8
_W2_ROW = 80     # w2 : rows 80:88,   cols 0:2    (8 x 2), cols 2:128 zero
_B2_ROW = 88     # b2 : row 88,       cols 0:2,            cols 2:128 zero
_SP_ROWS = 96
_SP_COLS = 128

_K = 9216        # lin0 fan-in (256 * 6 * 6)
_H0 = 64         # lin0 fan-out
_H1 = 8          # lin1 fan-out
_OUT = 2         # va_regressor fan-out


def pack_small_params(b0, w1, b1, w2, b2):
    sp = jnp.zeros((_SP_ROWS, _SP_COLS), jnp.float32)
    sp = sp.at[_B0_ROW, :_H0].set(b0.reshape(_H0))
    sp = sp.at[_W1_ROW:_W1_ROW + _H0, :_H1].set(w1)
    sp = sp.at[_B1_ROW, :_H1].set(b1.reshape(_H1))
    sp = sp.at[_W2_ROW:_W2_ROW + _H1, :_OUT].set(w2)
    sp = sp.at[_B2_ROW, :_OUT].set(b2.reshape(_OUT))
    return sp


def prepare_params(params):
    """One-time parameter prep (hoisted out of the per-call path)."""
    w0, b0, w1, b1, w2, b2 = params
    return (jnp.asarray(w0, jnp.bfloat16), pack_small_params(b0, w1, b1, w2, b2))


# ---------------------------------------------------------------------------
# Pallas kernel: fused MLP head.  grid = (num_batch_tiles,), batch "parallel".
# w0 and sp are grid-invariant (resident in VMEM for the whole call).
# ---------------------------------------------------------------------------
def _mlp_head_kernel(x_ref, w0_ref, sp_ref, o_ref):
    # lin0: on-chip f32->bf16 cast of x (VPU op hidden under the DMA), then
    # bf16 x bf16 -> f32 accumulate on the MXU.
    x_bf = x_ref[...].astype(jnp.bfloat16)                       # (tb, 9216)
    h0 = jnp.dot(x_bf, w0_ref[...], preferred_element_type=jnp.float32)
    h0 = jnp.maximum(h0 + sp_ref[_B0_ROW:_B0_ROW + 1, :_H0], 0.0)  # (tb, 64)

    # lin1 (f32 epilogue, tiny)
    w1 = sp_ref[_W1_ROW:_W1_ROW + _H0, :_H1]                     # (64, 8)
    b1 = sp_ref[_B1_ROW:_B1_ROW + 1, :_H1]                       # (1, 8)
    h1 = jnp.maximum(
        jnp.dot(h0, w1, preferred_element_type=jnp.float32) + b1, 0.0
    )                                                            # (tb, 8)

    # va_regressor against zero-padded 128-wide weights -> lane-dense (tb, 128)
    # output slab; only cols 0:2 are valid (rest are exactly 0).
    w2 = sp_ref[_W2_ROW:_W2_ROW + _H1, :]                        # (8, 128)
    b2 = sp_ref[_B2_ROW:_B2_ROW + 1, :]                          # (1, 128)
    o_ref[...] = jnp.dot(h1, w2, preferred_element_type=jnp.float32) + b2


def mlp_head_pallas(x_flat_f32, w0_bf16, small_params, *, tb):
    """x_flat_f32: (B, 9216) f32; w0_bf16: (9216, 64) bf16;
    small_params: (96, 128) f32 packed (b0, w1, b1, w2, b2).
    Returns (B, 128) f32; columns 0:2 hold the regressor output."""
    b, k_dim = x_flat_f32.shape
    grid_b = pl.cdiv(b, tb)

    return pl.pallas_call(
        _mlp_head_kernel,
        out_shape=jax.ShapeDtypeStruct((b, _SP_COLS), jnp.float32),
        grid_spec=pltpu.PrefetchScalarGridSpec(
            num_scalar_prefetch=0,
            grid=(grid_b,),
            in_specs=[
                pl.BlockSpec((tb, k_dim), lambda i: (i, 0)),            # x tile (f32)
                pl.BlockSpec((k_dim, _H0), lambda i: (0, 0)),           # w0 resident (bf16)
                pl.BlockSpec((_SP_ROWS, _SP_COLS), lambda i: (0, 0)),   # packed small params
            ],
            out_specs=pl.BlockSpec((tb, _SP_COLS), lambda i: (i, 0)),   # lane-dense slab
        ),
        compiler_params=pltpu.CompilerParams(
            dimension_semantics=("parallel",),
            vmem_limit_bytes=32 << 20,
        ),
    )(x_flat_f32, w0_bf16, small_params)


def _pick_tb(b):
    """Batch-tile heuristic.  Small batches: one block whose batch dim equals
    the full array dim (always a legal block shape, no padding).  Larger
    batches: split across >= 2 grid points ('parallel' axis -> both TCs on
    v7x), capped at 256 rows so 2x double-buffered f32 x tiles (~19 MB) plus
    the resident bf16 w0 stay inside a 32 MiB VMEM limit on every generation
    (v7x has only 64 MiB physical VMEM)."""
    if b < 32:
        return b
    half = -(-b // 2)
    return min(256, ((half + 7) // 8) * 8)


# ---------------------------------------------------------------------------
# Glue: adaptive average pooling to (6,6) + flatten  (NCHW, like PyTorch)
# ---------------------------------------------------------------------------
def adaptive_avgpool_6x6_and_flatten(x):
    """x: (B, 256, H, W) with H, W multiples of 6."""
    B, C, H, W = x.shape
    if H == 6 and W == 6:
        # identity pooling window -> just flatten (torch.flatten(x, 1) order)
        return x.reshape(B, C * 36)
    # TODO(synk): general AdaptiveAvgPool2d (uneven windows) not implemented;
    #             only H, W that are multiples of 6 are supported here.
    assert H % 6 == 0 and W % 6 == 0, "supports H, W multiples of 6"
    kh, kw = H // 6, W // 6
    x = x.reshape(B, C, 6, kh, 6, kw).mean(axis=(3, 5))     # (B, C, 6, 6)
    return x.reshape(B, C * 36)


# ---------------------------------------------------------------------------
# Forward wrapper (takes pre-prepared params; no per-call casts / packing / pad)
# ---------------------------------------------------------------------------
def regressor_light_forward(x_nchw, prepared):
    w0_bf16, sp = prepared
    x_flat = adaptive_avgpool_6x6_and_flatten(x_nchw)        # (B, 9216) f32
    B = x_flat.shape[0]
    tb = _pick_tb(B)
    out = mlp_head_pallas(x_flat, w0_bf16, sp, tb=tb)        # (B, 128)
    return out[:, :_OUT]                                     # (B, 2)


# ---------------------------------------------------------------------------
# Deterministic parameter init (PyTorch nn.Linear-style uniform ±1/sqrt(fan_in))
# ---------------------------------------------------------------------------
def init_linear(key, fan_in, fan_out):
    kw, kb = jax.random.split(key)
    bound = 1.0 / jnp.sqrt(fan_in)
    w = jax.random.uniform(kw, (fan_in, fan_out), jnp.float32, -bound, bound)
    b = jax.random.uniform(kb, (fan_out,), jnp.float32, -bound, bound)
    return w, b


if __name__ == "__main__":
    key = jax.random.PRNGKey(0)
    k_x, k0, k1, k2 = jax.random.split(key, 4)

    # AlexNet feature map: (B, 256, 6, 6) -> flatten gives 9216 features.
    B = 2
    x = jax.random.normal(k_x, (B, 256, 6, 6), jnp.float32)

    w0, b0 = init_linear(k0, 9216, 64)   # lin0
    w1, b1 = init_linear(k1, 64, 8)      # lin1
    w2, b2 = init_linear(k2, 8, 2)       # va_regressor
    params = (w0, b0, w1, b1, w2, b2)

    # One-time parameter prep (bf16 w0 + packed small params), outside the
    # per-call path.
    prepared = prepare_params(params)

    fwd = jax.jit(regressor_light_forward)
    out = jax.block_until_ready(fwd(x, prepared))

    # Reference in plain f32 JAX (dropout = identity at inference). Kernel uses
    # bf16 x/w0 for lin0, so compare at bf16-appropriate tolerance.
    x_flat = adaptive_avgpool_6x6_and_flatten(x)
    h0 = jnp.maximum(x_flat @ w0 + b0[None, :], 0.0)
    h1 = jnp.maximum(h0 @ w1 + b1[None, :], 0.0)
    ref = h1 @ w2 + b2[None, :]

    assert out.shape == (B, 2)
    assert jnp.allclose(out, ref, atol=2e-2, rtol=2e-2), (out, ref)

    print("KERNEL_OK")
</pallas_src>

<mosaic_0001>
module attributes {stable_mosaic.version = 11 : i64} {
  func.func @_mlp_head_kernel(%arg0: i32, %arg1: memref<2x9216xf32, #tpu.memory_space<vmem>>, %arg2: memref<9216x64xbf16, #tpu.memory_space<vmem>>, %arg3: memref<96x128xf32, #tpu.memory_space<vmem>>, %arg4: memref<2x128xf32, #tpu.memory_space<vmem>>) attributes {dimension_semantics = [#tpu.dimension_semantics<parallel>], iteration_bounds = array<i64: 1>, scalar_prefetch = 0 : i64, scratch_operands = 0 : i64, tpu.core_type = #tpu.core_type<tc>, window_params = [{transform_indices = @transform_0, window_bounds = array<i64: 2, 9216>}, {pipeline_mode = #tpu.pipeline_mode<synchronous>, transform_indices = @transform_1, window_bounds = array<i64: 9216, 64>}, {pipeline_mode = #tpu.pipeline_mode<synchronous>, transform_indices = @transform_2, window_bounds = array<i64: 96, 128>}, {transform_indices = @transform_3, window_bounds = array<i64: 2, 128>}]} {
    %c0 = arith.constant 0 : index
    %c0_0 = arith.constant 0 : index
    %0 = vector.load %arg1[%c0, %c0_0] : memref<2x9216xf32, #tpu.memory_space<vmem>>, vector<2x9216xf32>
    %1 = arith.truncf %0 : vector<2x9216xf32> to vector<2x9216xbf16>
    %c0_1 = arith.constant 0 : index
    %c0_2 = arith.constant 0 : index
    %2 = vector.load %arg2[%c0_1, %c0_2] : memref<9216x64xbf16, #tpu.memory_space<vmem>>, vector<9216x64xbf16>
    %cst = arith.constant dense<0.000000e+00> : vector<2x64xf32>
    %3 = tpu.matmul %1, %2, %cst {dimension_numbers = #tpu.dot_dimension_numbers<[1], [0], [0], [1], [0, 0, 1, 1], [], []>} : vector<2x9216xbf16>, vector<9216x64xbf16>, vector<2x64xf32> -> vector<2x64xf32>
    %c0_3 = arith.constant 0 : index
    %c0_4 = arith.constant 0 : index
    %4 = vector.load %arg3[%c0_3, %c0_4] : memref<96x128xf32, #tpu.memory_space<vmem>>, vector<1x64xf32>
    %5 = vector.broadcast %4 : vector<1x64xf32> to vector<2x64xf32>
    %6 = arith.addf %3, %5 : vector<2x64xf32>
    %cst_5 = arith.constant 0.000000e+00 : f32
    %7 = vector.broadcast %cst_5 : f32 to vector<2x64xf32>
    %8 = arith.maximumf %6, %7 : vector<2x64xf32>
    %c8 = arith.constant 8 : index
    %c0_6 = arith.constant 0 : index
    %9 = vector.load %arg3[%c8, %c0_6] : memref<96x128xf32, #tpu.memory_space<vmem>>, vector<64x8xf32>
    %c72 = arith.constant 72 : index
    %c0_7 = arith.constant 0 : index
    %10 = vector.load %arg3[%c72, %c0_7] : memref<96x128xf32, #tpu.memory_space<vmem>>, vector<1x8xf32>
    %cst_8 = arith.constant dense<0.000000e+00> : vector<2x8xf32>
    %11 = tpu.matmul %8, %9, %cst_8 {dimension_numbers = #tpu.dot_dimension_numbers<[1], [0], [0], [1], [0, 0, 1, 1], [], []>} : vector<2x64xf32>, vector<64x8xf32>, vector<2x8xf32> -> vector<2x8xf32>
    %12 = vector.broadcast %10 : vector<1x8xf32> to vector<2x8xf32>
    %13 = arith.addf %11, %12 : vector<2x8xf32>
    %cst_9 = arith.constant 0.000000e+00 : f32
    %14 = vector.broadcast %cst_9 : f32 to vector<2x8xf32>
    %15 = arith.maximumf %13, %14 : vector<2x8xf32>
    %c80 = arith.constant 80 : index
    %c0_10 = arith.constant 0 : index
    %16 = vector.load %arg3[%c80, %c0_10] : memref<96x128xf32, #tpu.memory_space<vmem>>, vector<8x128xf32>
    %c88 = arith.constant 88 : index
    %c0_11 = arith.constant 0 : index
    %17 = vector.load %arg3[%c88, %c0_11] : memref<96x128xf32, #tpu.memory_space<vmem>>, vector<1x128xf32>
    %cst_12 = arith.constant dense<0.000000e+00> : vector<2x128xf32>
    %18 = tpu.matmul %15, %16, %cst_12 {dimension_numbers = #tpu.dot_dimension_numbers<[1], [0], [0], [1], [0, 0, 1, 1], [], []>} : vector<2x8xf32>, vector<8x128xf32>, vector<2x128xf32> -> vector<2x128xf32>
    %19 = vector.broadcast %17 : vector<1x128xf32> to vector<2x128xf32>
    %20 = arith.addf %18, %19 : vector<2x128xf32>
    %c0_13 = arith.constant 0 : index
    %c0_14 = arith.constant 0 : index
    %21 = vector.load %arg4[%c0_13, %c0_14] : memref<2x128xf32, #tpu.memory_space<vmem>>, vector<2x128xf32>
    tpu.vector_store %arg4[%c0_13, %c0_14], %20 {strides = array<i32>} : memref<2x128xf32, #tpu.memory_space<vmem>>, vector<2x128xf32>,
    return
  }
  func.func @transform_0(%arg0: i32) -> (i32, i32) {
    %c0_i32 = arith.constant 0 : i32
    %c0_i32_0 = arith.constant 0 : i32
    return %arg0, %c0_i32 : i32, i32
  }
  func.func @transform_1(%arg0: i32) -> (i32, i32) {
    %c0_i32 = arith.constant 0 : i32
    %c0_i32_0 = arith.constant 0 : i32
    %c0_i32_1 = arith.constant 0 : i32
    return %c0_i32, %c0_i32_0 : i32, i32
  }
  func.func @transform_2(%arg0: i32) -> (i32, i32) {
    %c0_i32 = arith.constant 0 : i32
    %c0_i32_0 = arith.constant 0 : i32
    %c0_i32_1 = arith.constant 0 : i32
    return %c0_i32, %c0_i32_0 : i32, i32
  }
  func.func @transform_3(%arg0: i32) -> (i32, i32) {
    %c0_i32 = arith.constant 0 : i32
    %c0_i32_0 = arith.constant 0 : i32
    return %arg0, %c0_i32 : i32, i32
  }
}

</mosaic_0001>

<bundles_post_ra>
// kernel: regressor_light_forward.1
= control target key start
LH: loop header
LB: loop body
LE: loop exit
PB: predicated region body
PF: predicated region fallthrough
CT: control target
= control target key end

     0   :  { %s10750_s0 = inlined_call_operand.vmem [shape: f32[2,9216], index: 0, kind: input, shape index: {}]   ;;  %s10751_s1 = inlined_call_operand.vmem [shape: bf16[9216,64], index: 1, kind: input, shape index: {}]   ;;  %s10752_s2 = inlined_call_operand.vmem [shape: f32[96,128], index: 2, kind: input, shape index: {}]   ;;  %s10753_s3 = inlined_call_operand.hbm [shape: f32[2,128], index: 3, kind: output, shape index: {}]  }
   0x1   :  { %v8225_v0 = vld [vmem:[%s10751_s1 + $0x38] sm:$0xff]  ;;  %v8224_v4 = vld [vmem:[%s10751_s1 + $0x30] sm:$0xff]  ;;  %v8223_v8 = vld [vmem:[%s10751_s1 + $0x28] sm:$0xff] }
   0x2   :  { %v8233_v1 = vld [vmem:[%s10751_s1 + $0x78] sm:$0xff]  ;;  %4896 = vmatpush.bf16.msra.mxu0 %v8225_v0  ;;  %v8232_v5 = vld [vmem:[%s10751_s1 + $0x70] sm:$0xff]  ;;  %v8231_v9 = vld [vmem:[%s10751_s1 + $0x68] sm:$0xff] }
   0x3   :  { %v8241_v2 = vld [vmem:[%s10751_s1 + $0xb8] sm:$0xff]  ;;  %4909 = vmatpush.bf16.msra.mxu1 %v8233_v1  ;;  %v8240_v6 = vld [vmem:[%s10751_s1 + $0xb0] sm:$0xff]  ;;  %v8239_v10 = vld [vmem:[%s10751_s1 + $0xa8] sm:$0xff] }
   0x4   :  { %v8249_v3 = vld [vmem:[%s10751_s1 + $0xf8] sm:$0xff]  ;;  %4922 = vmatpush.bf16.msra.mxu2 %v8241_v2  ;;  %v8248_v7 = vld [vmem:[%s10751_s1 + $0xf0] sm:$0xff]  ;;  %v8247_v11 = vld [vmem:[%s10751_s1 + $0xe8] sm:$0xff] }
   0x5   :  { %4935 = vmatpush.bf16.msra.mxu3 %v8249_v3  ;;  %v8222_v12 = vld [vmem:[%s10751_s1 + $0x20] sm:$0xff]  ;;  %v8221_v16 = vld [vmem:[%s10751_s1 + $0x18] sm:$0xff]  ;;  %v8220_v20 = vld [vmem:[%s10751_s1 + $0x10] sm:$0xff] }
   0x6   :  { %4897 = vmatpush.bf16.msra.mxu0 %v8224_v4  ;;  %v8230_v13 = vld [vmem:[%s10751_s1 + $0x60] sm:$0xff]  ;;  %v8229_v17 = vld [vmem:[%s10751_s1 + $0x58] sm:$0xff]  ;;  %v8228_v21 = vld [vmem:[%s10751_s1 + $0x50] sm:$0xff] }
   0x7   :  { %4910 = vmatpush.bf16.msra.mxu1 %v8232_v5  ;;  %v8238_v14 = vld [vmem:[%s10751_s1 + $0xa0] sm:$0xff]  ;;  %v8237_v18 = vld [vmem:[%s10751_s1 + $0x98] sm:$0xff]  ;;  %v8236_v23 = vld [vmem:[%s10751_s1 + $0x90] sm:$0xff] }
   0x8   :  { %4923 = vmatpush.bf16.msra.mxu2 %v8240_v6  ;;  %v8246_v15 = vld [vmem:[%s10751_s1 + $0xe0] sm:$0xff]  ;;  %v8245_v19 = vld [vmem:[%s10751_s1 + $0xd8] sm:$0xff]  ;;  %v8244_v24 = vld [vmem:[%s10751_s1 + $0xd0] sm:$0xff] }
   0x9   :  { %4936 = vmatpush.bf16.msra.mxu3 %v8248_v7  ;;  %v15_v22 = vld [vmem:[%s10750_s0] sm:$0xff] }
   0xa   :  { %4898 = vmatpush.bf16.msra.mxu0 %v8223_v8  ;;  %51 = vst [vmem:[#allocation1] ss:$4 sm:$0xff] %v15_v22 }
   0xb   :  { %4911 = vmatpush.bf16.msra.mxu1 %v8231_v9 }
   0xc   :  { %4924 = vmatpush.bf16.msra.mxu2 %v8239_v10 }
   0xd   :  { %4937 = vmatpush.bf16.msra.mxu3 %v8247_v11 }
   0xe   :  { %4899 = vmatpush.bf16.msra.mxu0 %v8222_v12 }
   0xf   :  { %4912 = vmatpush.bf16.msra.mxu1 %v8230_v13 }
  0x10   :  { %4925 = vmatpush.bf16.msra.mxu2 %v8238_v14 }
  0x11   :  { %4938 = vmatpush.bf16.msra.mxu3 %v8246_v15 }
  0x12   :  { %4900 = vmatpush.bf16.msra.mxu0 %v8221_v16 }
  0x13   :  { %4913 = vmatpush.bf16.msra.mxu1 %v8229_v17 }
  0x14   :  { %4926 = vmatpush.bf16.msra.mxu2 %v8237_v18 }
  0x15   :  { %4939 = vmatpush.bf16.msra.mxu3 %v8245_v19 }
  0x16   :  { %8 = vsyncpa [#allocation3], 0  ;;  %4901 = vmatpush.bf16.msra.mxu0 %v8220_v20  ;;  %v8219_v25 = vld [vmem:[%s10751_s1 + $0x8] sm:$0xff]  ;;  %v8218_v29 = vld [vmem:[%s10751_s1] sm:$0xff]  ;;  %vm5843_vm0 = vcmask 523264   ;;  %vm5871_vm1 = vcmask 64512  }
  0x17   :  { %4914 = vmatpush.bf16.msra.mxu1 %v8228_v21  ;;  %v8227_v26 = vld [vmem:[%s10751_s1 + $0x48] sm:$0xff]  ;;  %v8226_v30 = vld [vmem:[%s10751_s1 + $0x40] sm:$0xff]  ;;  %v56_v32 = vld.sshfl [vmem:[#allocation1 + $0x10] sm:$0xff pattern:$0x73625140]  ;;  %s8824_s4 = smov [#allocation2]  }
  0x18   :  { %4927 = vmatpush.bf16.msra.mxu2 %v8236_v23  ;;  %v8235_v27 = vld [vmem:[%s10751_s1 + $0x88] sm:$0xff]  ;;  %v8234_v31 = vld [vmem:[%s10751_s1 + $0x80] sm:$0xff]  ;;  %v17_v35 = vld [vmem:[%s10750_s0 + $0x10] sm:$0xff]  ;;  %v216_v43 = vpack.c.bf16 %v56_v32, %v56_v32  ;;  %s5901_s5 = sshll.u32 %s8824_s4, 4  ;;  %s5903_s8 = sshll.u32 %s10753_s3, 4  ;;  %s5902_s5 = int_to_ptr.vmem [resolvable:$true] %s5901_s5  ;;  %s5904_s8 = int_to_ptr.hbm [resolvable:$true] %s5903_s8 }
  0x19   :  { %4940 = vmatpush.bf16.msra.mxu3 %v8244_v24  ;;  %v8243_v28 = vld [vmem:[%s10751_s1 + $0xc8] sm:$0xff]  ;;  %v8242_v33 = vld [vmem:[%s10751_s1 + $0xc0] sm:$0xff]  ;;  %v57_v36 = vld.sshfl [vmem:[#allocation1 + $0x18] sm:$0xff pattern:$0x73625140] }
  0x1a   :  { %4902 = vmatpush.bf16.msra.mxu0 %v8219_v25  ;;  %v54_v34 = vld.sshfl [vmem:[#allocation1] sm:$0xff pattern:$0x73625140]  ;;  %v55_v37 = vld.sshfl [vmem:[#allocation1 + $0x8] sm:$0xff pattern:$0x73625140]  ;;  %v217_v45 = vpack.c.bf16 %v57_v36, %v57_v36 }
  0x1b   :  { %4915 = vmatpush.bf16.msra.mxu1 %v8227_v26  ;;  %v8257_v38 = vld [vmem:[%s10751_s1 + $0x138] sm:$0xff]  ;;  %62 = vst [vmem:[#allocation1] ss:$4 sm:$0xff] %v17_v35  ;;  %v16_v42 = vld [vmem:[%s10750_s0 + $0x8] sm:$0xff]  ;;  %v214_v44 = vpack.c.bf16 %v54_v34, %v54_v34  ;;  %v215_v46 = vpack.c.bf16 %v55_v37, %v55_v37  ;;  %v8256_v47 = vld [vmem:[%s10751_s1 + $0x130] sm:$0xff] }
  0x1c   :  { %4928 = vmatpush.bf16.msra.mxu2 %v8235_v27  ;;  %v8265_v39 = vld [vmem:[%s10751_s1 + $0x178] sm:$0xff]  ;;  %53 = vst [vmem:[#allocation1 + $0x20] ss:$4 sm:$0xff] %v16_v42  ;;  %v8264_v48 = vld [vmem:[%s10751_s1 + $0x170] sm:$0xff]  ;;  %v8255_v51 = vld [vmem:[%s10751_s1 + $0x128] sm:$0xff] }
  0x1d   :  { %4941 = vmatpush.bf16.msra.mxu3 %v8243_v28  ;;  %v8273_v40 = vld [vmem:[%s10751_s1 + $0x1b8] sm:$0xff]  ;;  %v8272_v49 = vld [vmem:[%s10751_s1 + $0x1b0] sm:$0xff]  ;;  %v8263_v52 = vld [vmem:[%s10751_s1 + $0x168] sm:$0xff] }
  0x1e   :  { %v8281_v41 = vld [vmem:[%s10751_s1 + $0x1f8] sm:$0xff]  ;;  %4903 = vmatpush.bf16.msra.mxu0 %v8218_v29  ;;  %v8280_v50 = vld [vmem:[%s10751_s1 + $0x1f0] sm:$0xff]  ;;  %v8271_v53 = vld [vmem:[%s10751_s1 + $0x1a8] sm:$0xff] }
  0x1f   :  { %4916 = vmatpush.bf16.msra.mxu1 %v8226_v30  ;;  %v8279_v54 = vld [vmem:[%s10751_s1 + $0x1e8] sm:$0xff]  ;;  %v8254_v55 = vld [vmem:[%s10751_s1 + $0x120] sm:$0xff]  ;;  %v18_v59 = vld [vmem:[%s10750_s0 + $0x18] sm:$0xff] }
  0x20   :  { %4929 = vmatpush.bf16.msra.mxu2 %v8234_v31  ;;  %v8262_v57 = vld [vmem:[%s10751_s1 + $0x160] sm:$0xff]  ;;  %v8253_v0 = vld [vmem:[%s10751_s1 + $0x118] sm:$0xff]  ;;  %v8252_v4 = vld [vmem:[%s10751_s1 + $0x110] sm:$0xff] }
  0x21   :  { %4942 = vmatpush.bf16.msra.mxu3 %v8242_v33  ;;  %4904 = vmatmul.bf16.vlgmr.msra.gmra.mxu0 %v214_v44  ;;  %v8270_v62 = vld [vmem:[%s10751_s1 + $0x1a0] sm:$0xff]  ;;  %v8261_v1 = vld [vmem:[%s10751_s1 + $0x158] sm:$0xff]  ;;  %v8260_v5 = vld [vmem:[%s10751_s1 + $0x150] sm:$0xff] }
  0x22   :  { %4948 = vmatpush.bf16.msrb.mxu0 %v8257_v38  ;;  %4917 = vmatmul.bf16.vlgmr.msra.gmra.mxu1 %v215_v46  ;;  %v8278_v63 = vld [vmem:[%s10751_s1 + $0x1e0] sm:$0xff]  ;;  %v8269_v2 = vld [vmem:[%s10751_s1 + $0x198] sm:$0xff]  ;;  %v8268_v6 = vld [vmem:[%s10751_s1 + $0x190] sm:$0xff] }
  0x23   :  { %4961 = vmatpush.bf16.msrb.mxu1 %v8265_v39  ;;  %4930 = vmatmul.bf16.vlgmr.msra.gmra.mxu2 %v216_v43  ;;  %v8989_v56 = vld.sshfl [vmem:[#allocation1 + $0x30] sm:$0xff pattern:$0x73625140]  ;;  %v8994_v58 = vld.sshfl [vmem:[#allocation1 + $0x20] sm:$0xff pattern:$0x73625140] }
  0x24   :  { %4974 = vmatpush.bf16.msrb.mxu2 %v8273_v40  ;;  %4943 = vmatmul.bf16.vlgmr.msra.gmra.mxu3 %v217_v45  ;;  %v8999_v60 = vld.sshfl [vmem:[#allocation1 + $0x38] sm:$0xff pattern:$0x73625140]  ;;  %v9001_v61 = vld.sshfl [vmem:[#allocation1 + $0x28] sm:$0xff pattern:$0x73625140]  ;;  %v220_v21 = vpack.c.bf16 %v8989_v56, %v8989_v56  ;;  %v218_v22 = vpack.c.bf16 %v8994_v58, %v8994_v58 }
  0x25   :  { %4987 = vmatpush.bf16.msrb.mxu3 %v8281_v41  ;;  %63 = vst [vmem:[#allocation1 + $0x20] ss:$4 sm:$0xff] %v18_v59  ;;  %v8277_v3 = vld [vmem:[%s10751_s1 + $0x1d8] sm:$0xff]  ;;  %v8276_v7 = vld [vmem:[%s10751_s1 + $0x1d0] sm:$0xff]  ;;  %v8251_v8 = vld [vmem:[%s10751_s1 + $0x108] sm:$0xff]  ;;  %v221_v25 = vpack.c.bf16 %v8999_v60, %v8999_v60  ;;  %v219_v26 = vpack.c.bf16 %v9001_v61, %v9001_v61 }
  0x26   :  { %4949 = vmatpush.bf16.msrb.mxu0 %v8256_v47  ;;  %v8259_v9 = vld [vmem:[%s10751_s1 + $0x148] sm:$0xff]  ;;  %v8250_v12 = vld [vmem:[%s10751_s1 + $0x100] sm:$0xff]  ;;  %v8289_v16 = vld [vmem:[%s10751_s1 + $0x238] sm:$0xff] }
  0x27   :  { %4962 = vmatpush.bf16.msrb.mxu1 %v8264_v48  ;;  %v8267_v10 = vld [vmem:[%s10751_s1 + $0x188] sm:$0xff]  ;;  %v8258_v13 = vld [vmem:[%s10751_s1 + $0x140] sm:$0xff]  ;;  %v8297_v17 = vld [vmem:[%s10751_s1 + $0x278] sm:$0xff] }
  0x28   :  { %4975 = vmatpush.bf16.msrb.mxu2 %v8272_v49  ;;  %v8275_v11 = vld [vmem:[%s10751_s1 + $0x1c8] sm:$0xff]  ;;  %v8266_v14 = vld [vmem:[%s10751_s1 + $0x180] sm:$0xff]  ;;  %v8305_v18 = vld [vmem:[%s10751_s1 + $0x2b8] sm:$0xff] }
  0x29   :  { %4988 = vmatpush.bf16.msrb.mxu3 %v8280_v50  ;;  %v8274_v15 = vld [vmem:[%s10751_s1 + $0x1c0] sm:$0xff]  ;;  %v8313_v19 = vld [vmem:[%s10751_s1 + $0x2f8] sm:$0xff]  ;;  %v8288_v20 = vld [vmem:[%s10751_s1 + $0x230] sm:$0xff] }
  0x2a   :  { %4950 = vmatpush.bf16.msrb.mxu0 %v8255_v51  ;;  %v8296_v23 = vld [vmem:[%s10751_s1 + $0x270] sm:$0xff]  ;;  %v9086_v27 = vld.sshfl [vmem:[#allocation1] sm:$0xff pattern:$0x73625140]  ;;  %v8287_v33 = vld [vmem:[%s10751_s1 + $0x228] sm:$0xff] }
  0x2b   :  { %4963 = vmatpush.bf16.msrb.mxu1 %v8263_v52  ;;  %v8304_v24 = vld [vmem:[%s10751_s1 + $0x2b0] sm:$0xff]  ;;  %v9090_v29 = vld.sshfl [vmem:[#allocation1 + $0x8] sm:$0xff pattern:$0x73625140]  ;;  %v19_v31 = vld [vmem:[%s10750_s0 + $0x20] sm:$0xff]  ;;  %v222_v61 = vpack.c.bf16 %v9086_v27, %v9086_v27 }
  0x2c   :  { %4976 = vmatpush.bf16.msrb.mxu2 %v8271_v53  ;;  %v9088_v28 = vld.sshfl [vmem:[#allocation1 + $0x10] sm:$0xff pattern:$0x73625140]  ;;  %v9098_v32 = vld.sshfl [vmem:[#allocation1 + $0x18] sm:$0xff pattern:$0x73625140] }
  0x2d   :  { %4989 = vmatpush.bf16.msrb.mxu3 %v8279_v54  ;;  %v8312_v30 = vld [vmem:[%s10751_s1 + $0x2f0] sm:$0xff]  ;;  %72 = vst [vmem:[#allocation1] ss:$4 sm:$0xff] %v19_v31  ;;  %v8295_v34 = vld [vmem:[%s10751_s1 + $0x268] sm:$0xff]  ;;  %v8286_v37 = vld [vmem:[%s10751_s1 + $0x220] sm:$0xff] }
  0x2e   :  { %4951 = vmatpush.bf16.msrb.mxu0 %v8254_v55  ;;  %v8303_v35 = vld [vmem:[%s10751_s1 + $0x2a8] sm:$0xff]  ;;  %v8294_v38 = vld [vmem:[%s10751_s1 + $0x260] sm:$0xff]  ;;  %v8285_v41 = vld [vmem:[%s10751_s1 + $0x218] sm:$0xff] }
  0x2f   :  { %4964 = vmatpush.bf16.msrb.mxu1 %v8262_v57  ;;  %v8311_v36 = vld [vmem:[%s10751_s1 + $0x2e8] sm:$0xff]  ;;  %v8302_v39 = vld [vmem:[%s10751_s1 + $0x2a0] sm:$0xff]  ;;  %v8293_v42 = vld [vmem:[%s10751_s1 + $0x258] sm:$0xff] }
  0x30   :  { %4977 = vmatpush.bf16.msrb.mxu2 %v8270_v62  ;;  %v8310_v40 = vld [vmem:[%s10751_s1 + $0x2e0] sm:$0xff]  ;;  %v8301_v43 = vld [vmem:[%s10751_s1 + $0x298] sm:$0xff]  ;;  %v8284_v45 = vld [vmem:[%s10751_s1 + $0x210] sm:$0xff]  ;;  %v224_v62 = vpack.c.bf16 %v9088_v28, %v9088_v28 }
  0x31   :  { %4990 = vmatpush.bf16.msrb.mxu3 %v8278_v63  ;;  %v8309_v44 = vld [vmem:[%s10751_s1 + $0x2d8] sm:$0xff]  ;;  %v8292_v46 = vld [vmem:[%s10751_s1 + $0x250] sm:$0xff]  ;;  %v8283_v49 = vld [vmem:[%s10751_s1 + $0x208] sm:$0xff] }
  0x32   :  { %4952 = vmatpush.bf16.msrb.mxu0 %v8253_v0  ;;  %v8300_v47 = vld [vmem:[%s10751_s1 + $0x290] sm:$0xff]  ;;  %v8291_v50 = vld [vmem:[%s10751_s1 + $0x248] sm:$0xff]  ;;  %v8282_v53 = vld [vmem:[%s10751_s1 + $0x200] sm:$0xff]  ;;  %v223_v0 = vpack.c.bf16 %v9090_v29, %v9090_v29 }
  0x33   :  { %4965 = vmatpush.bf16.msrb.mxu1 %v8261_v1  ;;  %v8308_v48 = vld [vmem:[%s10751_s1 + $0x2d0] sm:$0xff]  ;;  %v8299_v51 = vld [vmem:[%s10751_s1 + $0x288] sm:$0xff]  ;;  %v8290_v54 = vld [vmem:[%s10751_s1 + $0x240] sm:$0xff]  ;;  %v225_v1 = vpack.c.bf16 %v9098_v32, %v9098_v32 }
  0x34   :  { %4978 = vmatpush.bf16.msrb.mxu2 %v8269_v2  ;;  %v8307_v52 = vld [vmem:[%s10751_s1 + $0x2c8] sm:$0xff]  ;;  %v8298_v55 = vld [vmem:[%s10751_s1 + $0x280] sm:$0xff]  ;;  %v8321_v57 = vld [vmem:[%s10751_s1 + $0x338] sm:$0xff] }
  0x35   :  { %4991 = vmatpush.bf16.msrb.mxu3 %v8277_v3  ;;  %v8306_v56 = vld [vmem:[%s10751_s1 + $0x2c0] sm:$0xff]  ;;  %v8329_v58 = vld [vmem:[%s10751_s1 + $0x378] sm:$0xff]  ;;  %v8320_v63 = vld [vmem:[%s10751_s1 + $0x330] sm:$0xff] }
  0x36   :  { %4953 = vmatpush.bf16.msrb.mxu0 %v8252_v4  ;;  %v8337_v59 = vld [vmem:[%s10751_s1 + $0x3b8] sm:$0xff]  ;;  %v8328_v2 = vld [vmem:[%s10751_s1 + $0x370] sm:$0xff]  ;;  %v9201_v4 = vld.sshfl [vmem:[#allocation1 + $0x20] sm:$0xff pattern:$0x73625140] }
  0x37   :  { %4966 = vmatpush.bf16.msrb.mxu1 %v8260_v5  ;;  %v8345_v60 = vld [vmem:[%s10751_s1 + $0x3f8] sm:$0xff]  ;;  %v8336_v3 = vld [vmem:[%s10751_s1 + $0x3b0] sm:$0xff]  ;;  %v8323_v27 = vld [vmem:[%s10751_s1 + $0x348] sm:$0xff] }
  0x38   :  { %4979 = vmatpush.bf16.msrb.mxu2 %v8268_v6  ;;  %v9203_v5 = vld.sshfl [vmem:[#allocation1 + $0x30] sm:$0xff pattern:$0x73625140]  ;;  %v9205_v6 = vld.sshfl [vmem:[#allocation1 + $0x28] sm:$0xff pattern:$0x73625140] }
  0x39   :  { %4992 = vmatpush.bf16.msrb.mxu3 %v8276_v7  ;;  %v8344_v7 = vld [vmem:[%s10751_s1 + $0x3f0] sm:$0xff]  ;;  %v8331_v28 = vld [vmem:[%s10751_s1 + $0x388] sm:$0xff]  ;;  %v8322_v31 = vld [vmem:[%s10751_s1 + $0x340] sm:$0xff] }
  0x3a   :  { %4954 = vmatpush.bf16.msrb.mxu0 %v8251_v8  ;;  %v20_v8 = vld [vmem:[%s10750_s0 + $0x28] sm:$0xff]  ;;  %v8330_v32 = vld [vmem:[%s10751_s1 + $0x380] sm:$0xff] }
  0x3b   :  { %4967 = vmatpush.bf16.msrb.mxu1 %v8259_v9  ;;  %v9213_v9 = vld.sshfl [vmem:[#allocation1 + $0x38] sm:$0xff pattern:$0x73625140]  ;;  %v8339_v29 = vld [vmem:[%s10751_s1 + $0x3c8] sm:$0xff] }
  0x3c   :  { %4980 = vmatpush.bf16.msrb.mxu2 %v8267_v10  ;;  %73 = vst [vmem:[#allocation1 + $0x20] ss:$4 sm:$0xff] %v20_v8  ;;  %v8319_v10 = vld [vmem:[%s10751_s1 + $0x328] sm:$0xff]  ;;  %v74_v8 = vld.sshfl [vmem:[#allocation1] sm:$0xff pattern:$0x73625140] }
  0x3d   :  { %4993 = vmatpush.bf16.msrb.mxu3 %v8275_v11  ;;  %v8327_v11 = vld [vmem:[%s10751_s1 + $0x368] sm:$0xff] }
  0x3e   :  { %4955 = vmatpush.bf16.msrb.mxu0 %v8250_v12  ;;  %v8335_v12 = vld [vmem:[%s10751_s1 + $0x3a8] sm:$0xff] }
  0x3f   :  { %4968 = vmatpush.bf16.msrb.mxu1 %v8258_v13  ;;  %v8343_v13 = vld [vmem:[%s10751_s1 + $0x3e8] sm:$0xff] }
  0x40   :  { %4981 = vmatpush.bf16.msrb.mxu2 %v8266_v14  ;;  %v8318_v14 = vld [vmem:[%s10751_s1 + $0x320] sm:$0xff] }
  0x41   :  { %4994 = vmatpush.bf16.msrb.mxu3 %v8274_v15  ;;  %4956 = vmatmul.bf16.vlgmr.msrb.gmra.mxu0 %v218_v22  ;;  %v8326_v15 = vld [vmem:[%s10751_s1 + $0x360] sm:$0xff]  ;;  %v8316_v22 = vld [vmem:[%s10751_s1 + $0x310] sm:$0xff] }
  0x42   :  { %5000 = vmatpush.bf16.msra.mxu0 %v8289_v16  ;;  %4969 = vmatmul.bf16.vlgmr.msrb.gmra.mxu1 %v219_v26  ;;  %v8334_v16 = vld [vmem:[%s10751_s1 + $0x3a0] sm:$0xff]  ;;  %v8315_v26 = vld [vmem:[%s10751_s1 + $0x308] sm:$0xff] }
  0x43   :  { %5013 = vmatpush.bf16.msra.mxu1 %v8297_v17  ;;  %4982 = vmatmul.bf16.vlgmr.msrb.gmra.mxu2 %v220_v21  ;;  %v8342_v17 = vld [vmem:[%s10751_s1 + $0x3e0] sm:$0xff]  ;;  %v8341_v21 = vld [vmem:[%s10751_s1 + $0x3d8] sm:$0xff] }
  0x44   :  { %5026 = vmatpush.bf16.msra.mxu2 %v8305_v18  ;;  %4995 = vmatmul.bf16.vlgmr.msrb.gmra.mxu3 %v221_v25  ;;  %v8317_v18 = vld [vmem:[%s10751_s1 + $0x318] sm:$0xff]  ;;  %v8340_v25 = vld [vmem:[%s10751_s1 + $0x3d0] sm:$0xff] }
  0x45   :  { %5039 = vmatpush.bf16.msra.mxu3 %v8313_v19  ;;  %v8325_v19 = vld [vmem:[%s10751_s1 + $0x358] sm:$0xff] }
  0x46   :  { %5001 = vmatpush.bf16.msra.mxu0 %v8288_v20  ;;  %v8333_v20 = vld [vmem:[%s10751_s1 + $0x398] sm:$0xff] }
  0x47   :  { %5014 = vmatpush.bf16.msra.mxu1 %v8296_v23  ;;  %v8324_v23 = vld [vmem:[%s10751_s1 + $0x350] sm:$0xff] }
  0x48   :  { %5027 = vmatpush.bf16.msra.mxu2 %v8304_v24  ;;  %v8332_v24 = vld [vmem:[%s10751_s1 + $0x390] sm:$0xff] }
  0x49   :  { %5040 = vmatpush.bf16.msra.mxu3 %v8312_v30  ;;  %v8314_v30 = vld [vmem:[%s10751_s1 + $0x300] sm:$0xff] }
  0x4a   :  { %5002 = vmatpush.bf16.msra.mxu0 %v8287_v33  ;;  %v8338_v33 = vld [vmem:[%s10751_s1 + $0x3c0] sm:$0xff] }
  0x4b   :  { %5015 = vmatpush.bf16.msra.mxu1 %v8295_v34  ;;  %v8353_v34 = vld [vmem:[%s10751_s1 + $0x438] sm:$0xff] }
  0x4c   :  { %5028 = vmatpush.bf16.msra.mxu2 %v8303_v35  ;;  %v8361_v35 = vld [vmem:[%s10751_s1 + $0x478] sm:$0xff] }
  0x4d   :  { %5041 = vmatpush.bf16.msra.mxu3 %v8311_v36  ;;  %v8369_v36 = vld [vmem:[%s10751_s1 + $0x4b8] sm:$0xff] }
  0x4e   :  { %5003 = vmatpush.bf16.msra.mxu0 %v8286_v37  ;;  %v8377_v37 = vld [vmem:[%s10751_s1 + $0x4f8] sm:$0xff] }
  0x4f   :  { %5016 = vmatpush.bf16.msra.mxu1 %v8294_v38  ;;  %v226_v38 = vpack.c.bf16 %v9201_v4, %v9201_v4  ;;  %v8362_v4 = vld [vmem:[%s10751_s1 + $0x480] sm:$0xff] }
  0x50   :  { %5029 = vmatpush.bf16.msra.mxu2 %v8302_v39  ;;  %v228_v39 = vpack.c.bf16 %v9203_v5, %v9203_v5  ;;  %v8370_v5 = vld [vmem:[%s10751_s1 + $0x4c0] sm:$0xff] }
  0x51   :  { %5042 = vmatpush.bf16.msra.mxu3 %v8310_v40  ;;  %v227_v40 = vpack.c.bf16 %v9205_v6, %v9205_v6  ;;  %v8385_v6 = vld [vmem:[%s10751_s1 + $0x538] sm:$0xff] }
  0x52   :  { %5004 = vmatpush.bf16.msra.mxu0 %v8285_v41  ;;  %v229_v41 = vpack.c.bf16 %v9213_v9, %v9213_v9  ;;  %v76_v9 = vld.sshfl [vmem:[#allocation1 + $0x10] sm:$0xff pattern:$0x73625140] }
  0x53   :  { %5017 = vmatpush.bf16.msra.mxu1 %v8293_v42  ;;  %v8352_v42 = vld [vmem:[%s10751_s1 + $0x430] sm:$0xff] }
  0x54   :  { %5030 = vmatpush.bf16.msra.mxu2 %v8301_v43  ;;  %v8360_v43 = vld [vmem:[%s10751_s1 + $0x470] sm:$0xff] }
  0x55   :  { %5043 = vmatpush.bf16.msra.mxu3 %v8309_v44  ;;  %v8368_v44 = vld [vmem:[%s10751_s1 + $0x4b0] sm:$0xff] }
  0x56   :  { %5005 = vmatpush.bf16.msra.mxu0 %v8284_v45  ;;  %v8376_v45 = vld [vmem:[%s10751_s1 + $0x4f0] sm:$0xff] }
  0x57   :  { %5018 = vmatpush.bf16.msra.mxu1 %v8292_v46  ;;  %v8351_v46 = vld [vmem:[%s10751_s1 + $0x428] sm:$0xff] }
  0x58   :  { %5031 = vmatpush.bf16.msra.mxu2 %v8300_v47  ;;  %v8359_v47 = vld [vmem:[%s10751_s1 + $0x468] sm:$0xff] }
  0x59   :  { %5044 = vmatpush.bf16.msra.mxu3 %v8308_v48  ;;  %v8367_v48 = vld [vmem:[%s10751_s1 + $0x4a8] sm:$0xff] }
  0x5a   :  { %5006 = vmatpush.bf16.msra.mxu0 %v8283_v49  ;;  %v8375_v49 = vld [vmem:[%s10751_s1 + $0x4e8] sm:$0xff] }
  0x5b   :  { %5019 = vmatpush.bf16.msra.mxu1 %v8291_v50  ;;  %v8350_v50 = vld [vmem:[%s10751_s1 + $0x420] sm:$0xff] }
  0x5c   :  { %5032 = vmatpush.bf16.msra.mxu2 %v8299_v51  ;;  %v8358_v51 = vld [vmem:[%s10751_s1 + $0x460] sm:$0xff] }
  0x5d   :  { %5045 = vmatpush.bf16.msra.mxu3 %v8307_v52  ;;  %v8366_v52 = vld [vmem:[%s10751_s1 + $0x4a0] sm:$0xff] }
  0x5e   :  { %5007 = vmatpush.bf16.msra.mxu0 %v8282_v53  ;;  %v8374_v53 = vld [vmem:[%s10751_s1 + $0x4e0] sm:$0xff] }
  0x5f   :  { %5020 = vmatpush.bf16.msra.mxu1 %v8290_v54  ;;  %v8349_v54 = vld [vmem:[%s10751_s1 + $0x418] sm:$0xff] }
  0x60   :  { %5033 = vmatpush.bf16.msra.mxu2 %v8298_v55  ;;  %v8357_v55 = vld [vmem:[%s10751_s1 + $0x458] sm:$0xff] }
  0x61   :  { %5046 = vmatpush.bf16.msra.mxu3 %v8306_v56  ;;  %5008 = vmatmul.bf16.vlgmr.msra.gmra.mxu0 %v222_v61  ;;  %v8365_v56 = vld [vmem:[%s10751_s1 + $0x498] sm:$0xff]  ;;  %v8372_v61 = vld [vmem:[%s10751_s1 + $0x4d0] sm:$0xff] }
  0x62   :  { %5052 = vmatpush.bf16.msrb.mxu0 %v8321_v57  ;;  %5021 = vmatmul.bf16.vlgmr.msra.gmra.mxu1 %v223_v0  ;;  %v8373_v57 = vld [vmem:[%s10751_s1 + $0x4d8] sm:$0xff]  ;;  %v8363_v0 = vld [vmem:[%s10751_s1 + $0x488] sm:$0xff] }
  0x63   :  { %5065 = vmatpush.bf16.msrb.mxu1 %v8329_v58  ;;  %5034 = vmatmul.bf16.vlgmr.msra.gmra.mxu2 %v224_v62  ;;  %v8348_v58 = vld [vmem:[%s10751_s1 + $0x410] sm:$0xff]  ;;  %v8347_v62 = vld [vmem:[%s10751_s1 + $0x408] sm:$0xff] }
  0x64   :  { %5078 = vmatpush.bf16.msrb.mxu2 %v8337_v59  ;;  %5047 = vmatmul.bf16.vlgmr.msra.gmra.mxu3 %v225_v1  ;;  %v8356_v59 = vld [vmem:[%s10751_s1 + $0x450] sm:$0xff]  ;;  %v8371_v1 = vld [vmem:[%s10751_s1 + $0x4c8] sm:$0xff] }
  0x65   :  { %5091 = vmatpush.bf16.msrb.mxu3 %v8345_v60  ;;  %v8364_v60 = vld [vmem:[%s10751_s1 + $0x490] sm:$0xff] }
  0x66   :  { %5053 = vmatpush.bf16.msrb.mxu0 %v8320_v63  ;;  %v8355_v63 = vld [vmem:[%s10751_s1 + $0x448] sm:$0xff] }
  0x67   :  { %5066 = vmatpush.bf16.msrb.mxu1 %v8328_v2  ;;  %v8346_v2 = vld [vmem:[%s10751_s1 + $0x400] sm:$0xff] }
  0x68   :  { %5079 = vmatpush.bf16.msrb.mxu2 %v8336_v3  ;;  %v8354_v3 = vld [vmem:[%s10751_s1 + $0x440] sm:$0xff] }
  0x69   :  { %5092 = vmatpush.bf16.msrb.mxu3 %v8344_v7  ;;  %v8393_v7 = vld [vmem:[%s10751_s1 + $0x578] sm:$0xff] }
  0x6a   :  { %5054 = vmatpush.bf16.msrb.mxu0 %v8319_v10  ;;  %v75_v10 = vld.sshfl [vmem:[#allocation1 + $0x8] sm:$0xff pattern:$0x73625140] }
  0x6b   :  { %5067 = vmatpush.bf16.msrb.mxu1 %v8327_v11  ;;  %v77_v11 = vld.sshfl [vmem:[#allocation1 + $0x18] sm:$0xff pattern:$0x73625140] }
  0x6c   :  { %5080 = vmatpush.bf16.msrb.mxu2 %v8335_v12  ;;  %v8401_v12 = vld [vmem:[%s10751_s1 + $0x5b8] sm:$0xff] }
  0x6d   :  { %5093 = vmatpush.bf16.msrb.mxu3 %v8343_v13  ;;  %v8409_v13 = vld [vmem:[%s10751_s1 + $0x5f8] sm:$0xff] }
  0x6e   :  { %5055 = vmatpush.bf16.msrb.mxu0 %v8318_v14  ;;  %v230_v14 = vpack.c.bf16 %v74_v8, %v74_v8  ;;  %v8416_v8 = vld [vmem:[%s10751_s1 + $0x630] sm:$0xff] }
  0x6f   :  { %5068 = vmatpush.bf16.msrb.mxu1 %v8326_v15  ;;  %v232_v15 = vpack.c.bf16 %v76_v9, %v76_v9  ;;  %v8424_v9 = vld [vmem:[%s10751_s1 + $0x670] sm:$0xff] }
  0x70   :  { %5081 = vmatpush.bf16.msrb.mxu2 %v8334_v16  ;;  %v231_v16 = vpack.c.bf16 %v75_v10, %v75_v10  ;;  %v8432_v10 = vld [vmem:[%s10751_s1 + $0x6b0] sm:$0xff] }
  0x71   :  { %5094 = vmatpush.bf16.msrb.mxu3 %v8342_v17  ;;  %v233_v17 = vpack.c.bf16 %v77_v11, %v77_v11  ;;  %v8440_v11 = vld [vmem:[%s10751_s1 + $0x6f0] sm:$0xff] }
  0x72   :  { %5056 = vmatpush.bf16.msrb.mxu0 %v8317_v18  ;;  %v8384_v18 = vld [vmem:[%s10751_s1 + $0x530] sm:$0xff] }
  0x73   :  { %5069 = vmatpush.bf16.msrb.mxu1 %v8325_v19  ;;  %v8392_v19 = vld [vmem:[%s10751_s1 + $0x570] sm:$0xff] }
  0x74   :  { %5082 = vmatpush.bf16.msrb.mxu2 %v8333_v20  ;;  %v8400_v20 = vld [vmem:[%s10751_s1 + $0x5b0] sm:$0xff] }
  0x75   :  { %5095 = vmatpush.bf16.msrb.mxu3 %v8341_v21  ;;  %v8408_v21 = vld [vmem:[%s10751_s1 + $0x5f0] sm:$0xff] }
  0x76   :  { %5057 = vmatpush.bf16.msrb.mxu0 %v8316_v22  ;;  %v8383_v22 = vld [vmem:[%s10751_s1 + $0x528] sm:$0xff] }
  0x77   :  { %5070 = vmatpush.bf16.msrb.mxu1 %v8324_v23  ;;  %v8391_v23 = vld [vmem:[%s10751_s1 + $0x568] sm:$0xff] }
  0x78   :  { %5083 = vmatpush.bf16.msrb.mxu2 %v8332_v24  ;;  %v8795_v24 = vld [vmem:[%s10752_s2] ss:$0 sm:$0xff] }
  0x79   :  { %5096 = vmatpush.bf16.msrb.mxu3 %v8340_v25  ;;  %v8399_v25 = vld [vmem:[%s10751_s1 + $0x5a8] sm:$0xff] }
  0x7a   :  { %5058 = vmatpush.bf16.msrb.mxu0 %v8315_v26  ;;  %v8407_v26 = vld [vmem:[%s10751_s1 + $0x5e8] sm:$0xff] }
  0x7b   :  { %5071 = vmatpush.bf16.msrb.mxu1 %v8323_v27 }
  0x7c   :  { %5084 = vmatpush.bf16.msrb.mxu2 %v8331_v28  ;;  %v8382_v28 = vld [vmem:[%s10751_s1 + $0x520] sm:$0xff] }
  0x7d   :  { %5097 = vmatpush.bf16.msrb.mxu3 %v8339_v29  ;;  %v8390_v29 = vld [vmem:[%s10751_s1 + $0x560] sm:$0xff] }
  0x7e   :  { %5059 = vmatpush.bf16.msrb.mxu0 %v8314_v30 }
  0x7f   :  { %5072 = vmatpush.bf16.msrb.mxu1 %v8322_v31 }
  0x80   :  { %5085 = vmatpush.bf16.msrb.mxu2 %v8330_v32  ;;  %v8398_v32 = vld [vmem:[%s10751_s1 + $0x5a0] sm:$0xff] }
  0x81   :  { %5098 = vmatpush.bf16.msrb.mxu3 %v8338_v33  ;;  %5060 = vmatmul.bf16.vlgmr.msrb.gmra.mxu0 %v226_v38  ;;  %v8406_v33 = vld [vmem:[%s10751_s1 + $0x5e0] sm:$0xff]  ;;  %v8405_v38 = vld [vmem:[%s10751_s1 + $0x5d8] sm:$0xff] }
  0x82   :  { %5104 = vmatpush.bf16.msra.mxu0 %v8353_v34  ;;  %5073 = vmatmul.bf16.vlgmr.msrb.gmra.mxu1 %v227_v40 }
  0x83   :  { %5117 = vmatpush.bf16.msra.mxu1 %v8361_v35  ;;  %5086 = vmatmul.bf16.vlgmr.msrb.gmra.mxu2 %v228_v39  ;;  %v8381_v35 = vld [vmem:[%s10751_s1 + $0x518] sm:$0xff] }
  0x84   :  { %5130 = vmatpush.bf16.msra.mxu2 %v8369_v36  ;;  %5099 = vmatmul.bf16.vlgmr.msrb.gmra.mxu3 %v229_v41  ;;  %v8389_v36 = vld [vmem:[%s10751_s1 + $0x558] sm:$0xff] }
  0x85   :  { %5143 = vmatpush.bf16.msra.mxu3 %v8377_v37  ;;  %v8397_v37 = vld [vmem:[%s10751_s1 + $0x598] sm:$0xff] }
  0x86   :  { %5105 = vmatpush.bf16.msra.mxu0 %v8352_v42 }
  0x87   :  { %5118 = vmatpush.bf16.msra.mxu1 %v8360_v43  ;;  %v8380_v43 = vld [vmem:[%s10751_s1 + $0x510] sm:$0xff] }
  0x88   :  { %5131 = vmatpush.bf16.msra.mxu2 %v8368_v44  ;;  %v8388_v44 = vld [vmem:[%s10751_s1 + $0x550] sm:$0xff] }
  0x89   :  { %5144 = vmatpush.bf16.msra.mxu3 %v8376_v45 }
  0x8a   :  { %5106 = vmatpush.bf16.msra.mxu0 %v8351_v46 }
  0x8b   :  { %5119 = vmatpush.bf16.msra.mxu1 %v8359_v47  ;;  %v8396_v47 = vld [vmem:[%s10751_s1 + $0x590] sm:$0xff] }
  0x8c   :  { %5132 = vmatpush.bf16.msra.mxu2 %v8367_v48  ;;  %v8404_v48 = vld [vmem:[%s10751_s1 + $0x5d0] sm:$0xff] }
  0x8d   :  { %5145 = vmatpush.bf16.msra.mxu3 %v8375_v49  ;;  %v8379_v49 = vld [vmem:[%s10751_s1 + $0x508] sm:$0xff] }
  0x8e   :  { %5107 = vmatpush.bf16.msra.mxu0 %v8350_v50  ;;  %v8387_v50 = vld [vmem:[%s10751_s1 + $0x548] sm:$0xff] }
  0x8f   :  { %5120 = vmatpush.bf16.msra.mxu1 %v8358_v51  ;;  %v21_v51 = vld [vmem:[%s10750_s0 + $0x30] sm:$0xff] }
  0x90   :  { %5133 = vmatpush.bf16.msra.mxu2 %v8366_v52  ;;  %v8395_v52 = vld [vmem:[%s10751_s1 + $0x588] sm:$0xff]  ;;  %82 = vst [vmem:[#allocation1] ss:$4 sm:$0xff] %v21_v51 }
  0x91   :  { %5146 = vmatpush.bf16.msra.mxu3 %v8374_v53  ;;  %v8403_v53 = vld [vmem:[%s10751_s1 + $0x5c8] sm:$0xff] }
  0x92   :  { %5108 = vmatpush.bf16.msra.mxu0 %v8349_v54 }
  0x93   :  { %5121 = vmatpush.bf16.msra.mxu1 %v8357_v55 }
  0x94   :  { %5134 = vmatpush.bf16.msra.mxu2 %v8365_v56  ;;  %v8378_v56 = vld [vmem:[%s10751_s1 + $0x500] sm:$0xff] }
  0x95   :  { %5147 = vmatpush.bf16.msra.mxu3 %v8373_v57  ;;  %v8386_v57 = vld [vmem:[%s10751_s1 + $0x540] sm:$0xff] }
  0x96   :  { %5109 = vmatpush.bf16.msra.mxu0 %v8348_v58  ;;  %v8394_v58 = vld [vmem:[%s10751_s1 + $0x580] sm:$0xff] }
  0x97   :  { %5122 = vmatpush.bf16.msra.mxu1 %v8356_v59  ;;  %v8402_v59 = vld [vmem:[%s10751_s1 + $0x5c0] sm:$0xff] }
  0x98   :  { %5135 = vmatpush.bf16.msra.mxu2 %v8364_v60  ;;  %v8417_v60 = vld [vmem:[%s10751_s1 + $0x638] sm:$0xff]  ;;  %v84_v51 = vld.sshfl [vmem:[#allocation1] sm:$0xff pattern:$0x73625140] }
  0x99   :  { %5148 = vmatpush.bf16.msra.mxu3 %v8372_v61  ;;  %v8425_v61 = vld [vmem:[%s10751_s1 + $0x678] sm:$0xff] }
  0x9a   :  { %5110 = vmatpush.bf16.msra.mxu0 %v8347_v62  ;;  %v78_v62 = vld.sshfl [vmem:[#allocation1 + $0x20] sm:$0xff pattern:$0x73625140] }
  0x9b   :  { %5123 = vmatpush.bf16.msra.mxu1 %v8355_v63  ;;  %v80_v63 = vld.sshfl [vmem:[#allocation1 + $0x30] sm:$0xff pattern:$0x73625140] }
  0x9c   :  { %5136 = vmatpush.bf16.msra.mxu2 %v8363_v0  ;;  %v79_v0 = vld.sshfl [vmem:[#allocation1 + $0x28] sm:$0xff pattern:$0x73625140] }
  0x9d   :  { %5149 = vmatpush.bf16.msra.mxu3 %v8371_v1  ;;  %v81_v1 = vld.sshfl [vmem:[#allocation1 + $0x38] sm:$0xff pattern:$0x73625140] }
  0x9e   :  { %5111 = vmatpush.bf16.msra.mxu0 %v8346_v2  ;;  %v4905_v27 = vpop.f32.mrf.mxu0  ;;  %v8433_v2 = vld [vmem:[%s10751_s1 + $0x6b8] sm:$0xff] }
  0x9f   :  { %5124 = vmatpush.bf16.msra.mxu1 %v8354_v3  ;;  %v4906_v30 = vadd.f32 %v8795_v24, %v4905_v27  ;;  %v4918_v31 = vpop.f32.mrf.mxu1  ;;  %v8441_v3 = vld [vmem:[%s10751_s1 + $0x6f8] sm:$0xff] }
  0xa0   :  { %5137 = vmatpush.bf16.msra.mxu2 %v8362_v4  ;;  %v234_v4 = vpack.c.bf16 %v78_v62, %v78_v62  ;;  %v8413_v24 = vld [vmem:[%s10751_s1 + $0x618] sm:$0xff]  ;;  %v8456_v62 = vld [vmem:[%s10751_s1 + $0x770] sm:$0xff] }
  0xa1   :  { %5150 = vmatpush.bf16.msra.mxu3 %v8370_v5  ;;  %5112 = vmatmul.bf16.vlgmr.msra.gmra.mxu0 %v230_v14  ;;  %v4919_v34 = vadd.f32 %v4918_v31, %v4906_v30  ;;  %v236_v5 = vpack.c.bf16 %v80_v63, %v80_v63  ;;  %v8431_v14 = vld [vmem:[%s10751_s1 + $0x6a8] sm:$0xff]  ;;  %v8437_v27 = vld [vmem:[%s10751_s1 + $0x6d8] sm:$0xff]  ;;  %v8464_v63 = vld [vmem:[%s10751_s1 + $0x7b0] sm:$0xff] }
  0xa2   :  { %5156 = vmatpush.bf16.msrb.mxu0 %v8385_v6  ;;  %5125 = vmatmul.bf16.vlgmr.msra.gmra.mxu1 %v231_v16  ;;  %v235_v6 = vpack.c.bf16 %v79_v0, %v79_v0  ;;  %v8472_v0 = vld [vmem:[%s10751_s1 + $0x7f0] sm:$0xff] }
  0xa3   :  { %5169 = vmatpush.bf16.msrb.mxu1 %v8393_v7  ;;  %5138 = vmatmul.bf16.vlgmr.msra.gmra.mxu2 %v232_v15  ;;  %v237_v7 = vpack.c.bf16 %v81_v1, %v81_v1  ;;  %v8439_v15 = vld [vmem:[%s10751_s1 + $0x6e8] sm:$0xff] }
  0xa4   :  { %5182 = vmatpush.bf16.msrb.mxu2 %v8401_v12  ;;  %5151 = vmatmul.bf16.vlgmr.msra.gmra.mxu3 %v233_v17  ;;  %v8415_v12 = vld [vmem:[%s10751_s1 + $0x628] sm:$0xff]  ;;  %v8414_v17 = vld [vmem:[%s10751_s1 + $0x620] sm:$0xff] }
  0xa5   :  { %5195 = vmatpush.bf16.msrb.mxu3 %v8409_v13  ;;  %v8423_v13 = vld [vmem:[%s10751_s1 + $0x668] sm:$0xff] }
  0xa6   :  { %5157 = vmatpush.bf16.msrb.mxu0 %v8384_v18  ;;  %v4931_v39 = vpop.f32.mrf.mxu2  ;;  %v4907_v42 = vpop.f32.mrf.mxu0  ;;  %v8422_v18 = vld [vmem:[%s10751_s1 + $0x660] sm:$0xff]  ;;  %v8447_v1 = vld [vmem:[%s10751_s1 + $0x728] sm:$0xff] }
  0xa7   :  { %5170 = vmatpush.bf16.msrb.mxu1 %v8392_v19  ;;  %v4932_v40 = vadd.f32 %v4931_v39, %v4919_v34  ;;  %v4944_v41 = vpop.f32.mrf.mxu3  ;;  %v4920_v46 = vpop.f32.mrf.mxu1  ;;  %v8419_v39 = vld [vmem:[%s10751_s1 + $0x648] sm:$0xff] }
  0xa8   :  { %5183 = vmatpush.bf16.msrb.mxu2 %v8400_v20  ;;  %v8435_v42 = vld [vmem:[%s10751_s1 + $0x6c8] sm:$0xff]  ;;  %v8418_v46 = vld [vmem:[%s10751_s1 + $0x640] sm:$0xff] }
  0xa9   :  { %5196 = vmatpush.bf16.msrb.mxu3 %v8408_v21  ;;  %v9460_v45 = vadd.f32 %v4944_v41, %v4932_v40  ;;  %v8430_v21 = vld [vmem:[%s10751_s1 + $0x6a0] sm:$0xff]  ;;  %v22_v40 = vld [vmem:[%s10750_s0 + $0x38] sm:$0xff]  ;;  %v8427_v41 = vld [vmem:[%s10751_s1 + $0x688] sm:$0xff] }
  0xaa   :  { %5158 = vmatpush.bf16.msrb.mxu0 %v8383_v22  ;;  %v8438_v22 = vld [vmem:[%s10751_s1 + $0x6e0] sm:$0xff]  ;;  %83 = vst [vmem:[#allocation1 + $0x20] ss:$4 sm:$0xff] %v22_v40 }
  0xab   :  { %5171 = vmatpush.bf16.msrb.mxu1 %v8391_v23 }
  0xac   :  { %5184 = vmatpush.bf16.msrb.mxu2 %v8399_v25  ;;  %v8421_v25 = vld [vmem:[%s10751_s1 + $0x658] sm:$0xff] }
  0xad   :  { %5197 = vmatpush.bf16.msrb.mxu3 %v8407_v26  ;;  %v8429_v26 = vld [vmem:[%s10751_s1 + $0x698] sm:$0xff] }
  0xae   :  { %5159 = vmatpush.bf16.msrb.mxu0 %v8382_v28  ;;  %v4933_v54 = vpop.f32.mrf.mxu2 }
  0xaf   :  { %5172 = vmatpush.bf16.msrb.mxu1 %v8390_v29  ;;  %v4946_v55 = vpop.f32.mrf.mxu3  ;;  %v87_v54 = vld.sshfl [vmem:[#allocation1 + $0x18] sm:$0xff pattern:$0x73625140] }
  0xb0   :  { %5185 = vmatpush.bf16.msrb.mxu2 %v8398_v32  ;;  %v8412_v32 = vld [vmem:[%s10751_s1 + $0x610] sm:$0xff]  ;;  %v8465_v55 = vld [vmem:[%s10751_s1 + $0x7b8] sm:$0xff] }
  0xb1   :  { %5198 = vmatpush.bf16.msrb.mxu3 %v8406_v33  ;;  %v8420_v33 = vld [vmem:[%s10751_s1 + $0x650] sm:$0xff]  ;;  %v88_v40 = vld.sshfl [vmem:[#allocation1 + $0x20] sm:$0xff pattern:$0x73625140] }
  0xb2   :  { %5160 = vmatpush.bf16.msrb.mxu0 %v8381_v35 }
  0xb3   :  { %5173 = vmatpush.bf16.msrb.mxu1 %v8389_v36  ;;  %v8428_v36 = vld [vmem:[%s10751_s1 + $0x690] sm:$0xff] }
  0xb4   :  { %5186 = vmatpush.bf16.msrb.mxu2 %v8397_v37  ;;  %v8436_v37 = vld [vmem:[%s10751_s1 + $0x6d0] sm:$0xff] }
  0xb5   :  { %5199 = vmatpush.bf16.msrb.mxu3 %v8405_v38  ;;  %v8411_v38 = vld [vmem:[%s10751_s1 + $0x608] sm:$0xff] }
  0xb6   :  { %5161 = vmatpush.bf16.msrb.mxu0 %v8380_v43 }
  0xb7   :  { %5174 = vmatpush.bf16.msrb.mxu1 %v8388_v44 }
  0xb8   :  { %5187 = vmatpush.bf16.msrb.mxu2 %v8396_v47  ;;  %v8426_v47 = vld [vmem:[%s10751_s1 + $0x680] sm:$0xff] }
  0xb9   :  { %5200 = vmatpush.bf16.msrb.mxu3 %v8404_v48  ;;  %v8434_v48 = vld [vmem:[%s10751_s1 + $0x6c0] sm:$0xff] }
  0xba   :  { %5162 = vmatpush.bf16.msrb.mxu0 %v8379_v49  ;;  %v8449_v49 = vld [vmem:[%s10751_s1 + $0x738] sm:$0xff] }
  0xbb   :  { %5175 = vmatpush.bf16.msrb.mxu1 %v8387_v50  ;;  %v8457_v50 = vld [vmem:[%s10751_s1 + $0x778] sm:$0xff] }
  0xbc   :  { %5188 = vmatpush.bf16.msrb.mxu2 %v8395_v52  ;;  %v86_v52 = vld.sshfl [vmem:[#allocation1 + $0x10] sm:$0xff pattern:$0x73625140] }
  0xbd   :  { %5201 = vmatpush.bf16.msrb.mxu3 %v8403_v53  ;;  %v85_v53 = vld.sshfl [vmem:[#allocation1 + $0x8] sm:$0xff pattern:$0x73625140] }
  0xbe   :  { %5163 = vmatpush.bf16.msrb.mxu0 %v8378_v56  ;;  %v4957_v16 = vpop.f32.mrf.mxu0  ;;  %v8473_v56 = vld [vmem:[%s10751_s1 + $0x7f8] sm:$0xff] }
  0xbf   :  { %5176 = vmatpush.bf16.msrb.mxu1 %v8386_v57  ;;  %v4958_v19 = vadd.f32 %v4957_v16, %v9460_v45  ;;  %v4970_v20 = vpop.f32.mrf.mxu1  ;;  %v8410_v45 = vld [vmem:[%s10751_s1 + $0x600] sm:$0xff]  ;;  %v238_v57 = vpack.c.bf16 %v84_v51, %v84_v51  ;;  %v8469_v16 = vld [vmem:[%s10751_s1 + $0x7d8] sm:$0xff]  ;;  %v8488_v51 = vld [vmem:[%s10751_s1 + $0x870] sm:$0xff] }
  0xc0   :  { %5189 = vmatpush.bf16.msrb.mxu2 %v8394_v58  ;;  %v240_v58 = vpack.c.bf16 %v86_v52, %v86_v52  ;;  %v8496_v52 = vld [vmem:[%s10751_s1 + $0x8b0] sm:$0xff] }
  0xc1   :  { %5202 = vmatpush.bf16.msrb.mxu3 %v8402_v59  ;;  %5164 = vmatmul.bf16.vlgmr.msrb.gmra.mxu0 %v234_v4  ;;  %v4971_v23 = vadd.f32 %v4970_v20, %v4958_v19  ;;  %v239_v59 = vpack.c.bf16 %v85_v53, %v85_v53  ;;  %v8471_v4 = vld [vmem:[%s10751_s1 + $0x7e8] sm:$0xff]  ;;  %v8504_v53 = vld [vmem:[%s10751_s1 + $0x8f0] sm:$0xff] }
  0xc2   :  { %5208 = vmatpush.bf16.msra.mxu0 %v8417_v60  ;;  %5177 = vmatmul.bf16.vlgmr.msrb.gmra.mxu1 %v235_v6  ;;  %v241_v60 = vpack.c.bf16 %v87_v54, %v87_v54  ;;  %v8479_v54 = vld [vmem:[%s10751_s1 + $0x828] sm:$0xff] }
  0xc3   :  { %5221 = vmatpush.bf16.msra.mxu1 %v8425_v61  ;;  %5190 = vmatmul.bf16.vlgmr.msrb.gmra.mxu2 %v236_v5  ;;  %v8448_v61 = vld [vmem:[%s10751_s1 + $0x730] sm:$0xff] }
  0xc4   :  { %5234 = vmatpush.bf16.msra.mxu2 %v8433_v2  ;;  %5203 = vmatmul.bf16.vlgmr.msrb.gmra.mxu3 %v237_v7  ;;  %v8455_v2 = vld [vmem:[%s10751_s1 + $0x768] sm:$0xff]  ;;  %v8446_v7 = vld [vmem:[%s10751_s1 + $0x720] sm:$0xff] }
  0xc5   :  { %5247 = vmatpush.bf16.msra.mxu3 %v8441_v3  ;;  %v8463_v3 = vld [vmem:[%s10751_s1 + $0x7a8] sm:$0xff] }
  0xc6   :  { %5209 = vmatpush.bf16.msra.mxu0 %v8416_v8  ;;  %v4983_v28 = vpop.f32.mrf.mxu2  ;;  %v4959_v31 = vpop.f32.mrf.mxu0  ;;  %v8454_v8 = vld [vmem:[%s10751_s1 + $0x760] sm:$0xff] }
  0xc7   :  { %5222 = vmatpush.bf16.msra.mxu1 %v8424_v9  ;;  %v4984_v29 = vadd.f32 %v4983_v28, %v4971_v23  ;;  %v4996_v30 = vpop.f32.mrf.mxu3  ;;  %v4972_v35 = vpop.f32.mrf.mxu1  ;;  %v8452_v23 = vld [vmem:[%s10751_s1 + $0x750] sm:$0xff]  ;;  %v8451_v28 = vld [vmem:[%s10751_s1 + $0x748] sm:$0xff] }
  0xc8   :  { %5235 = vmatpush.bf16.msra.mxu2 %v8432_v10  ;;  %v8462_v10 = vld [vmem:[%s10751_s1 + $0x7a0] sm:$0xff]  ;;  %v8467_v31 = vld [vmem:[%s10751_s1 + $0x7c8] sm:$0xff] }
  0xc9   :  { %5248 = vmatpush.bf16.msra.mxu3 %v8440_v11  ;;  %v9562_v34 = vadd.f32 %v4996_v30, %v4984_v29  ;;  %v8470_v11 = vld [vmem:[%s10751_s1 + $0x7e0] sm:$0xff]  ;;  %v8459_v30 = vld [vmem:[%s10751_s1 + $0x788] sm:$0xff] }
  0xca   :  { %5210 = vmatpush.bf16.msra.mxu0 %v8415_v12  ;;  %v23_v29 = vld [vmem:[%s10750_s0 + $0x40] sm:$0xff] }
  0xcb   :  { %5223 = vmatpush.bf16.msra.mxu1 %v8423_v13  ;;  %v8445_v13 = vld [vmem:[%s10751_s1 + $0x718] sm:$0xff]  ;;  %92 = vst [vmem:[#allocation1] ss:$4 sm:$0xff] %v23_v29  ;;  %v8450_v35 = vld [vmem:[%s10751_s1 + $0x740] sm:$0xff] }
  0xcc   :  { %5236 = vmatpush.bf16.msra.mxu2 %v8431_v14  ;;  %v8453_v14 = vld [vmem:[%s10751_s1 + $0x758] sm:$0xff] }
  0xcd   :  { %5249 = vmatpush.bf16.msra.mxu3 %v8439_v15  ;;  %v8461_v15 = vld [vmem:[%s10751_s1 + $0x798] sm:$0xff] }
  0xce   :  { %5211 = vmatpush.bf16.msra.mxu0 %v8414_v17  ;;  %v4985_v43 = vpop.f32.mrf.mxu2 }
  0xcf   :  { %5224 = vmatpush.bf16.msra.mxu1 %v8422_v18  ;;  %v4998_v44 = vpop.f32.mrf.mxu3  ;;  %v91_v43 = vld.sshfl [vmem:[#allocation1 + $0x38] sm:$0xff pattern:$0x73625140] }
  0xd0   :  { %5237 = vmatpush.bf16.msra.mxu2 %v8430_v21  ;;  %v8497_v44 = vld [vmem:[%s10751_s1 + $0x8b8] sm:$0xff] }
  0xd1   :  { %5250 = vmatpush.bf16.msra.mxu3 %v8438_v22  ;;  %v8444_v22 = vld [vmem:[%s10751_s1 + $0x710] sm:$0xff] }
  0xd2   :  { %5212 = vmatpush.bf16.msra.mxu0 %v8413_v24  ;;  %v94_v29 = vld.sshfl [vmem:[#allocation1] sm:$0xff pattern:$0x73625140] }
  0xd3   :  { %5225 = vmatpush.bf16.msra.mxu1 %v8421_v25  ;;  %v8460_v25 = vld [vmem:[%s10751_s1 + $0x790] sm:$0xff] }
  0xd4   :  { %5238 = vmatpush.bf16.msra.mxu2 %v8429_v26  ;;  %v8468_v26 = vld [vmem:[%s10751_s1 + $0x7d0] sm:$0xff] }
  0xd5   :  { %5251 = vmatpush.bf16.msra.mxu3 %v8437_v27  ;;  %v8443_v27 = vld [vmem:[%s10751_s1 + $0x708] sm:$0xff] }
  0xd6   :  { %5213 = vmatpush.bf16.msra.mxu0 %v8412_v32 }
  0xd7   :  { %5226 = vmatpush.bf16.msra.mxu1 %v8420_v33 }
  0xd8   :  { %5239 = vmatpush.bf16.msra.mxu2 %v8428_v36  ;;  %v8458_v36 = vld [vmem:[%s10751_s1 + $0x780] sm:$0xff] }
  0xd9   :  { %5252 = vmatpush.bf16.msra.mxu3 %v8436_v37  ;;  %v8466_v37 = vld [vmem:[%s10751_s1 + $0x7c0] sm:$0xff] }
  0xda   :  { %5214 = vmatpush.bf16.msra.mxu0 %v8411_v38  ;;  %v8481_v38 = vld [vmem:[%s10751_s1 + $0x838] sm:$0xff] }
  0xdb   :  { %5227 = vmatpush.bf16.msra.mxu1 %v8419_v39  ;;  %v8489_v39 = vld [vmem:[%s10751_s1 + $0x878] sm:$0xff] }
  0xdc   :  { %5240 = vmatpush.bf16.msra.mxu2 %v8427_v41  ;;  %v90_v41 = vld.sshfl [vmem:[#allocation1 + $0x30] sm:$0xff pattern:$0x73625140] }
  0xdd   :  { %5253 = vmatpush.bf16.msra.mxu3 %v8435_v42  ;;  %v89_v42 = vld.sshfl [vmem:[#allocation1 + $0x28] sm:$0xff pattern:$0x73625140] }
  0xde   :  { %5215 = vmatpush.bf16.msra.mxu0 %v8410_v45  ;;  %v5009_v5 = vpop.f32.mrf.mxu0  ;;  %v8505_v45 = vld [vmem:[%s10751_s1 + $0x8f8] sm:$0xff] }
  0xdf   :  { %5228 = vmatpush.bf16.msra.mxu1 %v8418_v46  ;;  %v5010_v6 = vadd.f32 %v5009_v5, %v9562_v34  ;;  %v5022_v9 = vpop.f32.mrf.mxu1  ;;  %v8442_v34 = vld [vmem:[%s10751_s1 + $0x700] sm:$0xff]  ;;  %v242_v46 = vpack.c.bf16 %v88_v40, %v88_v40  ;;  %v8501_v5 = vld [vmem:[%s10751_s1 + $0x8d8] sm:$0xff]  ;;  %v8520_v40 = vld [vmem:[%s10751_s1 + $0x970] sm:$0xff] }
  0xe0   :  { %5241 = vmatpush.bf16.msra.mxu2 %v8426_v47  ;;  %v244_v47 = vpack.c.bf16 %v90_v41, %v90_v41  ;;  %v8528_v41 = vld [vmem:[%s10751_s1 + $0x9b0] sm:$0xff] }
  0xe1   :  { %5254 = vmatpush.bf16.msra.mxu3 %v8434_v48  ;;  %5216 = vmatmul.bf16.vlgmr.msra.gmra.mxu0 %v238_v57  ;;  %v5023_v12 = vadd.f32 %v5022_v9, %v5010_v6  ;;  %v243_v48 = vpack.c.bf16 %v89_v42, %v89_v42  ;;  %v8503_v57 = vld [vmem:[%s10751_s1 + $0x8e8] sm:$0xff]  ;;  %v8536_v42 = vld [vmem:[%s10751_s1 + $0x9f0] sm:$0xff] }
  0xe2   :  { %5260 = vmatpush.bf16.msrb.mxu0 %v8449_v49  ;;  %5229 = vmatmul.bf16.vlgmr.msra.gmra.mxu1 %v239_v59  ;;  %v245_v49 = vpack.c.bf16 %v91_v43, %v91_v43  ;;  %v8511_v43 = vld [vmem:[%s10751_s1 + $0x928] sm:$0xff] }
  0xe3   :  { %5273 = vmatpush.bf16.msrb.mxu1 %v8457_v50  ;;  %5242 = vmatmul.bf16.vlgmr.msra.gmra.mxu2 %v240_v58  ;;  %v8480_v50 = vld [vmem:[%s10751_s1 + $0x830] sm:$0xff] }
  0xe4   :  { %5286 = vmatpush.bf16.msrb.mxu2 %v8465_v55  ;;  %5255 = vmatmul.bf16.vlgmr.msra.gmra.mxu3 %v241_v60  ;;  %v8487_v55 = vld [vmem:[%s10751_s1 + $0x868] sm:$0xff]  ;;  %v8478_v60 = vld [vmem:[%s10751_s1 + $0x820] sm:$0xff] }
  0xe5   :  { %5299 = vmatpush.bf16.msrb.mxu3 %v8473_v56  ;;  %v8495_v56 = vld [vmem:[%s10751_s1 + $0x8a8] sm:$0xff] }
  0xe6   :  { %5261 = vmatpush.bf16.msrb.mxu0 %v8448_v61  ;;  %v5035_v17 = vpop.f32.mrf.mxu2  ;;  %v5011_v20 = vpop.f32.mrf.mxu0  ;;  %v8486_v61 = vld [vmem:[%s10751_s1 + $0x860] sm:$0xff] }
  0xe7   :  { %5274 = vmatpush.bf16.msrb.mxu1 %v8456_v62  ;;  %v5036_v18 = vadd.f32 %v5035_v17, %v5023_v12  ;;  %v5048_v19 = vpop.f32.mrf.mxu3  ;;  %v5024_v24 = vpop.f32.mrf.mxu1  ;;  %v8484_v12 = vld [vmem:[%s10751_s1 + $0x850] sm:$0xff]  ;;  %v8483_v17 = vld [vmem:[%s10751_s1 + $0x848] sm:$0xff] }
  0xe8   :  { %5287 = vmatpush.bf16.msrb.mxu2 %v8464_v63  ;;  %v8494_v63 = vld [vmem:[%s10751_s1 + $0x8a0] sm:$0xff]  ;;  %v8499_v20 = vld [vmem:[%s10751_s1 + $0x8c8] sm:$0xff] }
  0xe9   :  { %5300 = vmatpush.bf16.msrb.mxu3 %v8472_v0  ;;  %v9658_v21 = vadd.f32 %v5048_v19, %v5036_v18  ;;  %v8502_v0 = vld [vmem:[%s10751_s1 + $0x8e0] sm:$0xff]  ;;  %v24_v18 = vld [vmem:[%s10750_s0 + $0x48] sm:$0xff] }
  0xea   :  { %5262 = vmatpush.bf16.msrb.mxu0 %v8447_v1  ;;  %v8491_v19 = vld [vmem:[%s10751_s1 + $0x888] sm:$0xff]  ;;  %93 = vst [vmem:[#allocation1 + $0x20] ss:$4 sm:$0xff] %v24_v18  ;;  %v8482_v24 = vld [vmem:[%s10751_s1 + $0x840] sm:$0xff] }
  0xeb   :  { %5275 = vmatpush.bf16.msrb.mxu1 %v8455_v2  ;;  %v8477_v2 = vld [vmem:[%s10751_s1 + $0x818] sm:$0xff] }
  0xec   :  { %5288 = vmatpush.bf16.msrb.mxu2 %v8463_v3  ;;  %v8485_v3 = vld [vmem:[%s10751_s1 + $0x858] sm:$0xff] }
  0xed   :  { %5301 = vmatpush.bf16.msrb.mxu3 %v8471_v4  ;;  %v8493_v4 = vld [vmem:[%s10751_s1 + $0x898] sm:$0xff] }
  0xee   :  { %5263 = vmatpush.bf16.msrb.mxu0 %v8446_v7  ;;  %v5037_v32 = vpop.f32.mrf.mxu2 }
  0xef   :  { %5276 = vmatpush.bf16.msrb.mxu1 %v8454_v8  ;;  %v5050_v33 = vpop.f32.mrf.mxu3  ;;  %v97_v32 = vld.sshfl [vmem:[#allocation1 + $0x18] sm:$0xff pattern:$0x73625140] }
  0xf0   :  { %5289 = vmatpush.bf16.msrb.mxu2 %v8462_v10  ;;  %v8529_v33 = vld [vmem:[%s10751_s1 + $0x9b8] sm:$0xff] }
  0xf1   :  { %5302 = vmatpush.bf16.msrb.mxu3 %v8470_v11  ;;  %v8476_v11 = vld [vmem:[%s10751_s1 + $0x810] sm:$0xff]  ;;  %v98_v18 = vld.sshfl [vmem:[#allocation1 + $0x20] sm:$0xff pattern:$0x73625140] }
  0xf2   :  { %5264 = vmatpush.bf16.msrb.mxu0 %v8445_v13 }
  0xf3   :  { %5277 = vmatpush.bf16.msrb.mxu1 %v8453_v14  ;;  %v8492_v14 = vld [vmem:[%s10751_s1 + $0x890] sm:$0xff] }
  0xf4   :  { %5290 = vmatpush.bf16.msrb.mxu2 %v8461_v15  ;;  %v8500_v15 = vld [vmem:[%s10751_s1 + $0x8d0] sm:$0xff] }
  0xf5   :  { %5303 = vmatpush.bf16.msrb.mxu3 %v8469_v16  ;;  %v8475_v16 = vld [vmem:[%s10751_s1 + $0x808] sm:$0xff] }
  0xf6   :  { %5265 = vmatpush.bf16.msrb.mxu0 %v8444_v22 }
  0xf7   :  { %5278 = vmatpush.bf16.msrb.mxu1 %v8452_v23  ;;  %v8474_v23 = vld [vmem:[%s10751_s1 + $0x800] sm:$0xff] }
  0xf8   :  { %5291 = vmatpush.bf16.msrb.mxu2 %v8460_v25  ;;  %v8490_v25 = vld [vmem:[%s10751_s1 + $0x880] sm:$0xff] }
  0xf9   :  { %5304 = vmatpush.bf16.msrb.mxu3 %v8468_v26  ;;  %v8498_v26 = vld [vmem:[%s10751_s1 + $0x8c0] sm:$0xff] }
  0xfa   :  { %5266 = vmatpush.bf16.msrb.mxu0 %v8443_v27  ;;  %v8513_v27 = vld [vmem:[%s10751_s1 + $0x938] sm:$0xff] }
  0xfb   :  { %5279 = vmatpush.bf16.msrb.mxu1 %v8451_v28  ;;  %v8521_v28 = vld [vmem:[%s10751_s1 + $0x978] sm:$0xff] }
  0xfc   :  { %5292 = vmatpush.bf16.msrb.mxu2 %v8459_v30  ;;  %v96_v30 = vld.sshfl [vmem:[#allocation1 + $0x10] sm:$0xff pattern:$0x73625140] }
  0xfd   :  { %5305 = vmatpush.bf16.msrb.mxu3 %v8467_v31  ;;  %v95_v31 = vld.sshfl [vmem:[#allocation1 + $0x8] sm:$0xff pattern:$0x73625140] }
  0xfe   :  { %5267 = vmatpush.bf16.msrb.mxu0 %v8442_v34  ;;  %v5061_v58 = vpop.f32.mrf.mxu0  ;;  %v8537_v34 = vld [vmem:[%s10751_s1 + $0x9f8] sm:$0xff] }
  0xff   :  { %5280 = vmatpush.bf16.msrb.mxu1 %v8450_v35  ;;  %v5062_v59 = vadd.f32 %v5061_v58, %v9658_v21  ;;  %v5074_v62 = vpop.f32.mrf.mxu1  ;;  %v246_v35 = vpack.c.bf16 %v94_v29, %v94_v29  ;;  %v8533_v58 = vld [vmem:[%s10751_s1 + $0x9d8] sm:$0xff]  ;;  %v8552_v29 = vld [vmem:[%s10751_s1 + $0xa70] sm:$0xff] }
 0x100   :  { %5293 = vmatpush.bf16.msrb.mxu2 %v8458_v36  ;;  %v248_v36 = vpack.c.bf16 %v96_v30, %v96_v30  ;;  %v8560_v30 = vld [vmem:[%s10751_s1 + $0xab0] sm:$0xff] }
 0x101   :  { %5306 = vmatpush.bf16.msrb.mxu3 %v8466_v37  ;;  %5268 = vmatmul.bf16.vlgmr.msrb.gmra.mxu0 %v242_v46  ;;  %v5075_v1 = vadd.f32 %v5074_v62, %v5062_v59  ;;  %v247_v37 = vpack.c.bf16 %v95_v31, %v95_v31  ;;  %v8535_v46 = vld [vmem:[%s10751_s1 + $0x9e8] sm:$0xff]  ;;  %v8568_v31 = vld [vmem:[%s10751_s1 + $0xaf0] sm:$0xff] }
 0x102   :  { %5312 = vmatpush.bf16.msra.mxu0 %v8481_v38  ;;  %5281 = vmatmul.bf16.vlgmr.msrb.gmra.mxu1 %v243_v48  ;;  %v249_v38 = vpack.c.bf16 %v97_v32, %v97_v32  ;;  %v8543_v32 = vld [vmem:[%s10751_s1 + $0xa28] sm:$0xff] }
 0x103   :  { %5325 = vmatpush.bf16.msra.mxu1 %v8489_v39  ;;  %5294 = vmatmul.bf16.vlgmr.msrb.gmra.mxu2 %v244_v47  ;;  %v8512_v39 = vld [vmem:[%s10751_s1 + $0x930] sm:$0xff] }
 0x104   :  { %5338 = vmatpush.bf16.msra.mxu2 %v8497_v44  ;;  %5307 = vmatmul.bf16.vlgmr.msrb.gmra.mxu3 %v245_v49  ;;  %v8519_v44 = vld [vmem:[%s10751_s1 + $0x968] sm:$0xff]  ;;  %v8510_v49 = vld [vmem:[%s10751_s1 + $0x920] sm:$0xff] }
 0x105   :  { %5351 = vmatpush.bf16.msra.mxu3 %v8505_v45  ;;  %v8527_v45 = vld [vmem:[%s10751_s1 + $0x9a8] sm:$0xff] }
 0x106   :  { %5313 = vmatpush.bf16.msra.mxu0 %v8480_v50  ;;  %v5087_v6 = vpop.f32.mrf.mxu2  ;;  %v5063_v9 = vpop.f32.mrf.mxu0  ;;  %v8518_v50 = vld [vmem:[%s10751_s1 + $0x960] sm:$0xff] }
 0x107   :  { %5326 = vmatpush.bf16.msra.mxu1 %v8488_v51  ;;  %v5088_v7 = vadd.f32 %v5087_v6, %v5075_v1  ;;  %v5100_v8 = vpop.f32.mrf.mxu3  ;;  %v5076_v13 = vpop.f32.mrf.mxu1  ;;  %v8516_v1 = vld [vmem:[%s10751_s1 + $0x950] sm:$0xff]  ;;  %v8515_v6 = vld [vmem:[%s10751_s1 + $0x948] sm:$0xff] }
 0x108   :  { %5339 = vmatpush.bf16.msra.mxu2 %v8496_v52  ;;  %v8526_v52 = vld [vmem:[%s10751_s1 + $0x9a0] sm:$0xff]  ;;  %v8531_v9 = vld [vmem:[%s10751_s1 + $0x9c8] sm:$0xff] }
 0x109   :  { %5352 = vmatpush.bf16.msra.mxu3 %v8504_v53  ;;  %v9760_v10 = vadd.f32 %v5100_v8, %v5088_v7  ;;  %v8534_v53 = vld [vmem:[%s10751_s1 + $0x9e0] sm:$0xff]  ;;  %v25_v7 = vld [vmem:[%s10750_s0 + $0x50] sm:$0xff]  ;;  %v8523_v8 = vld [vmem:[%s10751_s1 + $0x988] sm:$0xff] }
 0x10a   :  { %5314 = vmatpush.bf16.msra.mxu0 %v8479_v54  ;;  %102 = vst [vmem:[#allocation1] ss:$4 sm:$0xff] %v25_v7  ;;  %v8514_v13 = vld [vmem:[%s10751_s1 + $0x940] sm:$0xff] }
 0x10b   :  { %5327 = vmatpush.bf16.msra.mxu1 %v8487_v55  ;;  %v8509_v55 = vld [vmem:[%s10751_s1 + $0x918] sm:$0xff] }
 0x10c   :  { %5340 = vmatpush.bf16.msra.mxu2 %v8495_v56  ;;  %v8517_v56 = vld [vmem:[%s10751_s1 + $0x958] sm:$0xff] }
 0x10d   :  { %5353 = vmatpush.bf16.msra.mxu3 %v8503_v57  ;;  %v8525_v57 = vld [vmem:[%s10751_s1 + $0x998] sm:$0xff] }
 0x10e   :  { %5315 = vmatpush.bf16.msra.mxu0 %v8478_v60  ;;  %v5089_v21 = vpop.f32.mrf.mxu2 }
 0x10f   :  { %5328 = vmatpush.bf16.msra.mxu1 %v8486_v61  ;;  %v5102_v22 = vpop.f32.mrf.mxu3  ;;  %v101_v21 = vld.sshfl [vmem:[#allocation1 + $0x38] sm:$0xff pattern:$0x73625140] }
 0x110   :  { %5341 = vmatpush.bf16.msra.mxu2 %v8494_v63  ;;  %v8561_v22 = vld [vmem:[%s10751_s1 + $0xab8] sm:$0xff] }
 0x111   :  { %5354 = vmatpush.bf16.msra.mxu3 %v8502_v0  ;;  %v8508_v0 = vld [vmem:[%s10751_s1 + $0x910] sm:$0xff]  ;;  %v104_v7 = vld.sshfl [vmem:[#allocation1] sm:$0xff pattern:$0x73625140] }
 0x112   :  { %5316 = vmatpush.bf16.msra.mxu0 %v8477_v2 }
 0x113   :  { %5329 = vmatpush.bf16.msra.mxu1 %v8485_v3  ;;  %v8524_v3 = vld [vmem:[%s10751_s1 + $0x990] sm:$0xff] }
 0x114   :  { %5342 = vmatpush.bf16.msra.mxu2 %v8493_v4  ;;  %v8532_v4 = vld [vmem:[%s10751_s1 + $0x9d0] sm:$0xff] }
 0x115   :  { %5355 = vmatpush.bf16.msra.mxu3 %v8501_v5  ;;  %v8507_v5 = vld [vmem:[%s10751_s1 + $0x908] sm:$0xff] }
 0x116   :  { %5317 = vmatpush.bf16.msra.mxu0 %v8476_v11 }
 0x117   :  { %5330 = vmatpush.bf16.msra.mxu1 %v8484_v12  ;;  %v8506_v12 = vld [vmem:[%s10751_s1 + $0x900] sm:$0xff] }
 0x118   :  { %5343 = vmatpush.bf16.msra.mxu2 %v8492_v14  ;;  %v8522_v14 = vld [vmem:[%s10751_s1 + $0x980] sm:$0xff] }
 0x119   :  { %5356 = vmatpush.bf16.msra.mxu3 %v8500_v15  ;;  %v8530_v15 = vld [vmem:[%s10751_s1 + $0x9c0] sm:$0xff] }
 0x11a   :  { %5318 = vmatpush.bf16.msra.mxu0 %v8475_v16  ;;  %v8545_v16 = vld [vmem:[%s10751_s1 + $0xa38] sm:$0xff] }
 0x11b   :  { %5331 = vmatpush.bf16.msra.mxu1 %v8483_v17  ;;  %v8553_v17 = vld [vmem:[%s10751_s1 + $0xa78] sm:$0xff] }
 0x11c   :  { %5344 = vmatpush.bf16.msra.mxu2 %v8491_v19  ;;  %v100_v19 = vld.sshfl [vmem:[#allocation1 + $0x30] sm:$0xff pattern:$0x73625140] }
 0x11d   :  { %5357 = vmatpush.bf16.msra.mxu3 %v8499_v20  ;;  %v99_v20 = vld.sshfl [vmem:[#allocation1 + $0x28] sm:$0xff pattern:$0x73625140] }
 0x11e   :  { %5319 = vmatpush.bf16.msra.mxu0 %v8474_v23  ;;  %v5113_v47 = vpop.f32.mrf.mxu0  ;;  %v8569_v23 = vld [vmem:[%s10751_s1 + $0xaf8] sm:$0xff] }
 0x11f   :  { %5332 = vmatpush.bf16.msra.mxu1 %v8482_v24  ;;  %v5114_v48 = vadd.f32 %v5113_v47, %v9760_v10  ;;  %v5126_v51 = vpop.f32.mrf.mxu1  ;;  %v250_v24 = vpack.c.bf16 %v98_v18, %v98_v18  ;;  %v8565_v47 = vld [vmem:[%s10751_s1 + $0xad8] sm:$0xff]  ;;  %v8584_v18 = vld [vmem:[%s10751_s1 + $0xb70] sm:$0xff] }
 0x120   :  { %5345 = vmatpush.bf16.msra.mxu2 %v8490_v25  ;;  %v252_v25 = vpack.c.bf16 %v100_v19, %v100_v19  ;;  %v8592_v19 = vld [vmem:[%s10751_s1 + $0xbb0] sm:$0xff] }
 0x121   :  { %5358 = vmatpush.bf16.msra.mxu3 %v8498_v26  ;;  %5320 = vmatmul.bf16.vlgmr.msra.gmra.mxu0 %v246_v35  ;;  %v5127_v54 = vadd.f32 %v5126_v51, %v5114_v48  ;;  %v251_v26 = vpack.c.bf16 %v99_v20, %v99_v20  ;;  %v8567_v35 = vld [vmem:[%s10751_s1 + $0xae8] sm:$0xff]  ;;  %v8600_v20 = vld [vmem:[%s10751_s1 + $0xbf0] sm:$0xff] }
 0x122   :  { %5364 = vmatpush.bf16.msrb.mxu0 %v8513_v27  ;;  %5333 = vmatmul.bf16.vlgmr.msra.gmra.mxu1 %v247_v37  ;;  %v253_v27 = vpack.c.bf16 %v101_v21, %v101_v21  ;;  %v8575_v21 = vld [vmem:[%s10751_s1 + $0xb28] sm:$0xff] }
 0x123   :  { %5377 = vmatpush.bf16.msrb.mxu1 %v8521_v28  ;;  %5346 = vmatmul.bf16.vlgmr.msra.gmra.mxu2 %v248_v36  ;;  %v8544_v28 = vld [vmem:[%s10751_s1 + $0xa30] sm:$0xff] }
 0x124   :  { %5390 = vmatpush.bf16.msrb.mxu2 %v8529_v33  ;;  %5359 = vmatmul.bf16.vlgmr.msra.gmra.mxu3 %v249_v38  ;;  %v8551_v33 = vld [vmem:[%s10751_s1 + $0xa68] sm:$0xff]  ;;  %v8542_v38 = vld [vmem:[%s10751_s1 + $0xa20] sm:$0xff] }
 0x125   :  { %5403 = vmatpush.bf16.msrb.mxu3 %v8537_v34  ;;  %v8559_v34 = vld [vmem:[%s10751_s1 + $0xaa8] sm:$0xff] }
 0x126   :  { %5365 = vmatpush.bf16.msrb.mxu0 %v8512_v39  ;;  %v5139_v59 = vpop.f32.mrf.mxu2  ;;  %v5115_v62 = vpop.f32.mrf.mxu0  ;;  %v8550_v39 = vld [vmem:[%s10751_s1 + $0xa60] sm:$0xff] }
 0x127   :  { %5378 = vmatpush.bf16.msrb.mxu1 %v8520_v40  ;;  %v5140_v60 = vadd.f32 %v5139_v59, %v5127_v54  ;;  %v5152_v61 = vpop.f32.mrf.mxu3  ;;  %v5128_v2 = vpop.f32.mrf.mxu1  ;;  %v8548_v54 = vld [vmem:[%s10751_s1 + $0xa50] sm:$0xff]  ;;  %v8547_v59 = vld [vmem:[%s10751_s1 + $0xa48] sm:$0xff] }
 0x128   :  { %5391 = vmatpush.bf16.msrb.mxu2 %v8528_v41  ;;  %v8558_v41 = vld [vmem:[%s10751_s1 + $0xaa0] sm:$0xff]  ;;  %v8563_v62 = vld [vmem:[%s10751_s1 + $0xac8] sm:$0xff] }
 0x129   :  { %5404 = vmatpush.bf16.msrb.mxu3 %v8536_v42  ;;  %v9862_v63 = vadd.f32 %v5152_v61, %v5140_v60  ;;  %v8566_v42 = vld [vmem:[%s10751_s1 + $0xae0] sm:$0xff]  ;;  %v26_v60 = vld [vmem:[%s10750_s0 + $0x58] sm:$0xff]  ;;  %v8555_v61 = vld [vmem:[%s10751_s1 + $0xa88] sm:$0xff] }
 0x12a   :  { %5366 = vmatpush.bf16.msrb.mxu0 %v8511_v43  ;;  %103 = vst [vmem:[#allocation1 + $0x20] ss:$4 sm:$0xff] %v26_v60  ;;  %v8546_v2 = vld [vmem:[%s10751_s1 + $0xa40] sm:$0xff] }
 0x12b   :  { %5379 = vmatpush.bf16.msrb.mxu1 %v8519_v44  ;;  %v8541_v44 = vld [vmem:[%s10751_s1 + $0xa18] sm:$0xff] }
 0x12c   :  { %5392 = vmatpush.bf16.msrb.mxu2 %v8527_v45  ;;  %v8549_v45 = vld [vmem:[%s10751_s1 + $0xa58] sm:$0xff] }
 0x12d   :  { %5405 = vmatpush.bf16.msrb.mxu3 %v8535_v46  ;;  %v8557_v46 = vld [vmem:[%s10751_s1 + $0xa98] sm:$0xff] }
 0x12e   :  { %5367 = vmatpush.bf16.msrb.mxu0 %v8510_v49  ;;  %v5141_v10 = vpop.f32.mrf.mxu2 }
 0x12f   :  { %5380 = vmatpush.bf16.msrb.mxu1 %v8518_v50  ;;  %v5154_v11 = vpop.f32.mrf.mxu3  ;;  %v107_v10 = vld.sshfl [vmem:[#allocation1 + $0x18] sm:$0xff pattern:$0x73625140] }
 0x130   :  { %5393 = vmatpush.bf16.msrb.mxu2 %v8526_v52  ;;  %v8593_v11 = vld [vmem:[%s10751_s1 + $0xbb8] sm:$0xff] }
 0x131   :  { %5406 = vmatpush.bf16.msrb.mxu3 %v8534_v53  ;;  %v8540_v53 = vld [vmem:[%s10751_s1 + $0xa10] sm:$0xff]  ;;  %v108_v60 = vld.sshfl [vmem:[#allocation1 + $0x20] sm:$0xff pattern:$0x73625140] }
 0x132   :  { %5368 = vmatpush.bf16.msrb.mxu0 %v8509_v55 }
 0x133   :  { %5381 = vmatpush.bf16.msrb.mxu1 %v8517_v56  ;;  %v8556_v56 = vld [vmem:[%s10751_s1 + $0xa90] sm:$0xff] }
 0x134   :  { %5394 = vmatpush.bf16.msrb.mxu2 %v8525_v57  ;;  %v8564_v57 = vld [vmem:[%s10751_s1 + $0xad0] sm:$0xff] }
 0x135   :  { %5407 = vmatpush.bf16.msrb.mxu3 %v8533_v58  ;;  %v8539_v58 = vld [vmem:[%s10751_s1 + $0xa08] sm:$0xff] }
 0x136   :  { %5369 = vmatpush.bf16.msrb.mxu0 %v8508_v0 }
 0x137   :  { %5382 = vmatpush.bf16.msrb.mxu1 %v8516_v1  ;;  %v8538_v1 = vld [vmem:[%s10751_s1 + $0xa00] sm:$0xff] }
 0x138   :  { %5395 = vmatpush.bf16.msrb.mxu2 %v8524_v3  ;;  %v8554_v3 = vld [vmem:[%s10751_s1 + $0xa80] sm:$0xff] }
 0x139   :  { %5408 = vmatpush.bf16.msrb.mxu3 %v8532_v4  ;;  %v8562_v4 = vld [vmem:[%s10751_s1 + $0xac0] sm:$0xff] }
 0x13a   :  { %5370 = vmatpush.bf16.msrb.mxu0 %v8507_v5  ;;  %v8577_v5 = vld [vmem:[%s10751_s1 + $0xb38] sm:$0xff] }
 0x13b   :  { %5383 = vmatpush.bf16.msrb.mxu1 %v8515_v6  ;;  %v8585_v6 = vld [vmem:[%s10751_s1 + $0xb78] sm:$0xff] }
 0x13c   :  { %5396 = vmatpush.bf16.msrb.mxu2 %v8523_v8  ;;  %v106_v8 = vld.sshfl [vmem:[#allocation1 + $0x10] sm:$0xff pattern:$0x73625140] }
 0x13d   :  { %5409 = vmatpush.bf16.msrb.mxu3 %v8531_v9  ;;  %v105_v9 = vld.sshfl [vmem:[#allocation1 + $0x8] sm:$0xff pattern:$0x73625140] }
 0x13e   :  { %5371 = vmatpush.bf16.msrb.mxu0 %v8506_v12  ;;  %v5165_v36 = vpop.f32.mrf.mxu0  ;;  %v8601_v12 = vld [vmem:[%s10751_s1 + $0xbf8] sm:$0xff] }
 0x13f   :  { %5384 = vmatpush.bf16.msrb.mxu1 %v8514_v13  ;;  %v5166_v37 = vadd.f32 %v5165_v36, %v9862_v63  ;;  %v5178_v40 = vpop.f32.mrf.mxu1  ;;  %v254_v13 = vpack.c.bf16 %v104_v7, %v104_v7  ;;  %v8597_v36 = vld [vmem:[%s10751_s1 + $0xbd8] sm:$0xff]  ;;  %v8616_v7 = vld [vmem:[%s10751_s1 + $0xc70] sm:$0xff] }
 0x140   :  { %5397 = vmatpush.bf16.msrb.mxu2 %v8522_v14  ;;  %v256_v14 = vpack.c.bf16 %v106_v8, %v106_v8  ;;  %v8624_v8 = vld [vmem:[%s10751_s1 + $0xcb0] sm:$0xff] }
 0x141   :  { %5410 = vmatpush.bf16.msrb.mxu3 %v8530_v15  ;;  %5372 = vmatmul.bf16.vlgmr.msrb.gmra.mxu0 %v250_v24  ;;  %v5179_v43 = vadd.f32 %v5178_v40, %v5166_v37  ;;  %v255_v15 = vpack.c.bf16 %v105_v9, %v105_v9  ;;  %v8599_v24 = vld [vmem:[%s10751_s1 + $0xbe8] sm:$0xff]  ;;  %v8632_v9 = vld [vmem:[%s10751_s1 + $0xcf0] sm:$0xff] }
 0x142   :  { %5416 = vmatpush.bf16.msra.mxu0 %v8545_v16  ;;  %5385 = vmatmul.bf16.vlgmr.msrb.gmra.mxu1 %v251_v26  ;;  %v257_v16 = vpack.c.bf16 %v107_v10, %v107_v10  ;;  %v8607_v10 = vld [vmem:[%s10751_s1 + $0xc28] sm:$0xff] }
 0x143   :  { %5429 = vmatpush.bf16.msra.mxu1 %v8553_v17  ;;  %5398 = vmatmul.bf16.vlgmr.msrb.gmra.mxu2 %v252_v25  ;;  %v8576_v17 = vld [vmem:[%s10751_s1 + $0xb30] sm:$0xff] }
 0x144   :  { %5442 = vmatpush.bf16.msra.mxu2 %v8561_v22  ;;  %5411 = vmatmul.bf16.vlgmr.msrb.gmra.mxu3 %v253_v27  ;;  %v8583_v22 = vld [vmem:[%s10751_s1 + $0xb68] sm:$0xff]  ;;  %v8574_v27 = vld [vmem:[%s10751_s1 + $0xb20] sm:$0xff] }
 0x145   :  { %5455 = vmatpush.bf16.msra.mxu3 %v8569_v23  ;;  %v8591_v23 = vld [vmem:[%s10751_s1 + $0xba8] sm:$0xff] }
 0x146   :  { %5417 = vmatpush.bf16.msra.mxu0 %v8544_v28  ;;  %v5191_v48 = vpop.f32.mrf.mxu2  ;;  %v5167_v51 = vpop.f32.mrf.mxu0  ;;  %v8582_v28 = vld [vmem:[%s10751_s1 + $0xb60] sm:$0xff] }
 0x147   :  { %5430 = vmatpush.bf16.msra.mxu1 %v8552_v29  ;;  %v5192_v49 = vadd.f32 %v5191_v48, %v5179_v43  ;;  %v5204_v50 = vpop.f32.mrf.mxu3  ;;  %v5180_v55 = vpop.f32.mrf.mxu1  ;;  %v8580_v43 = vld [vmem:[%s10751_s1 + $0xb50] sm:$0xff]  ;;  %v8579_v48 = vld [vmem:[%s10751_s1 + $0xb48] sm:$0xff] }
 0x148   :  { %5443 = vmatpush.bf16.msra.mxu2 %v8560_v30  ;;  %v8590_v30 = vld [vmem:[%s10751_s1 + $0xba0] sm:$0xff]  ;;  %v8595_v51 = vld [vmem:[%s10751_s1 + $0xbc8] sm:$0xff] }
 0x149   :  { %5456 = vmatpush.bf16.msra.mxu3 %v8568_v31  ;;  %v9964_v52 = vadd.f32 %v5204_v50, %v5192_v49  ;;  %v8598_v31 = vld [vmem:[%s10751_s1 + $0xbe0] sm:$0xff]  ;;  %v8587_v50 = vld [vmem:[%s10751_s1 + $0xb88] sm:$0xff] }
 0x14a   :  { %5418 = vmatpush.bf16.msra.mxu0 %v8543_v32  ;;  %v27_v49 = vld [vmem:[%s10750_s0 + $0x60] sm:$0xff] }
 0x14b   :  { %5431 = vmatpush.bf16.msra.mxu1 %v8551_v33  ;;  %v8573_v33 = vld [vmem:[%s10751_s1 + $0xb18] sm:$0xff]  ;;  %112 = vst [vmem:[#allocation1] ss:$4 sm:$0xff] %v27_v49  ;;  %v8578_v55 = vld [vmem:[%s10751_s1 + $0xb40] sm:$0xff] }
 0x14c   :  { %5444 = vmatpush.bf16.msra.mxu2 %v8559_v34  ;;  %v8581_v34 = vld [vmem:[%s10751_s1 + $0xb58] sm:$0xff] }
 0x14d   :  { %5457 = vmatpush.bf16.msra.mxu3 %v8567_v35  ;;  %v8589_v35 = vld [vmem:[%s10751_s1 + $0xb98] sm:$0xff] }
 0x14e   :  { %5419 = vmatpush.bf16.msra.mxu0 %v8542_v38  ;;  %v5193_v63 = vpop.f32.mrf.mxu2 }
 0x14f   :  { %5432 = vmatpush.bf16.msra.mxu1 %v8550_v39  ;;  %v5206_v0 = vpop.f32.mrf.mxu3  ;;  %v111_v63 = vld.sshfl [vmem:[#allocation1 + $0x38] sm:$0xff pattern:$0x73625140] }
 0x150   :  { %5445 = vmatpush.bf16.msra.mxu2 %v8558_v41  ;;  %v8625_v0 = vld [vmem:[%s10751_s1 + $0xcb8] sm:$0xff] }
 0x151   :  { %5458 = vmatpush.bf16.msra.mxu3 %v8566_v42  ;;  %v8572_v42 = vld [vmem:[%s10751_s1 + $0xb10] sm:$0xff] }
 0x152   :  { %5420 = vmatpush.bf16.msra.mxu0 %v8541_v44  ;;  %v114_v49 = vld.sshfl [vmem:[#allocation1] sm:$0xff pattern:$0x73625140] }
 0x153   :  { %5433 = vmatpush.bf16.msra.mxu1 %v8549_v45  ;;  %v8588_v45 = vld [vmem:[%s10751_s1 + $0xb90] sm:$0xff] }
 0x154   :  { %5446 = vmatpush.bf16.msra.mxu2 %v8557_v46  ;;  %v8596_v46 = vld [vmem:[%s10751_s1 + $0xbd0] sm:$0xff] }
 0x155   :  { %5459 = vmatpush.bf16.msra.mxu3 %v8565_v47  ;;  %v8571_v47 = vld [vmem:[%s10751_s1 + $0xb08] sm:$0xff] }
 0x156   :  { %5421 = vmatpush.bf16.msra.mxu0 %v8540_v53 }
 0x157   :  { %5434 = vmatpush.bf16.msra.mxu1 %v8548_v54  ;;  %v8570_v54 = vld [vmem:[%s10751_s1 + $0xb00] sm:$0xff] }
 0x158   :  { %5447 = vmatpush.bf16.msra.mxu2 %v8556_v56  ;;  %v8586_v56 = vld [vmem:[%s10751_s1 + $0xb80] sm:$0xff] }
 0x159   :  { %5460 = vmatpush.bf16.msra.mxu3 %v8564_v57  ;;  %v8594_v57 = vld [vmem:[%s10751_s1 + $0xbc0] sm:$0xff] }
 0x15a   :  { %5422 = vmatpush.bf16.msra.mxu0 %v8539_v58  ;;  %v8609_v58 = vld [vmem:[%s10751_s1 + $0xc38] sm:$0xff] }
 0x15b   :  { %5435 = vmatpush.bf16.msra.mxu1 %v8547_v59  ;;  %v8617_v59 = vld [vmem:[%s10751_s1 + $0xc78] sm:$0xff] }
 0x15c   :  { %5448 = vmatpush.bf16.msra.mxu2 %v8555_v61  ;;  %v110_v61 = vld.sshfl [vmem:[#allocation1 + $0x30] sm:$0xff pattern:$0x73625140] }
 0x15d   :  { %5461 = vmatpush.bf16.msra.mxu3 %v8563_v62  ;;  %v109_v62 = vld.sshfl [vmem:[#allocation1 + $0x28] sm:$0xff pattern:$0x73625140] }
 0x15e   :  { %5423 = vmatpush.bf16.msra.mxu0 %v8538_v1  ;;  %v5217_v25 = vpop.f32.mrf.mxu0  ;;  %v8633_v1 = vld [vmem:[%s10751_s1 + $0xcf8] sm:$0xff] }
 0x15f   :  { %5436 = vmatpush.bf16.msra.mxu1 %v8546_v2  ;;  %v5218_v26 = vadd.f32 %v5217_v25, %v9964_v52  ;;  %v5230_v29 = vpop.f32.mrf.mxu1  ;;  %v258_v2 = vpack.c.bf16 %v108_v60, %v108_v60  ;;  %v8629_v25 = vld [vmem:[%s10751_s1 + $0xcd8] sm:$0xff]  ;;  %v8648_v60 = vld [vmem:[%s10751_s1 + $0xd70] sm:$0xff] }
 0x160   :  { %5449 = vmatpush.bf16.msra.mxu2 %v8554_v3  ;;  %v260_v3 = vpack.c.bf16 %v110_v61, %v110_v61  ;;  %v8656_v61 = vld [vmem:[%s10751_s1 + $0xdb0] sm:$0xff] }
 0x161   :  { %5462 = vmatpush.bf16.msra.mxu3 %v8562_v4  ;;  %5424 = vmatmul.bf16.vlgmr.msra.gmra.mxu0 %v254_v13  ;;  %v5231_v32 = vadd.f32 %v5230_v29, %v5218_v26  ;;  %v259_v4 = vpack.c.bf16 %v109_v62, %v109_v62  ;;  %v8631_v13 = vld [vmem:[%s10751_s1 + $0xce8] sm:$0xff]  ;;  %v8664_v62 = vld [vmem:[%s10751_s1 + $0xdf0] sm:$0xff] }
 0x162   :  { %5468 = vmatpush.bf16.msrb.mxu0 %v8577_v5  ;;  %5437 = vmatmul.bf16.vlgmr.msra.gmra.mxu1 %v255_v15  ;;  %v261_v5 = vpack.c.bf16 %v111_v63, %v111_v63  ;;  %v8639_v63 = vld [vmem:[%s10751_s1 + $0xd28] sm:$0xff] }
 0x163   :  { %5481 = vmatpush.bf16.msrb.mxu1 %v8585_v6  ;;  %5450 = vmatmul.bf16.vlgmr.msra.gmra.mxu2 %v256_v14  ;;  %v8608_v6 = vld [vmem:[%s10751_s1 + $0xc30] sm:$0xff] }
 0x164   :  { %5494 = vmatpush.bf16.msrb.mxu2 %v8593_v11  ;;  %5463 = vmatmul.bf16.vlgmr.msra.gmra.mxu3 %v257_v16  ;;  %v8615_v11 = vld [vmem:[%s10751_s1 + $0xc68] sm:$0xff]  ;;  %v8606_v16 = vld [vmem:[%s10751_s1 + $0xc20] sm:$0xff] }
 0x165   :  { %5507 = vmatpush.bf16.msrb.mxu3 %v8601_v12  ;;  %v8623_v12 = vld [vmem:[%s10751_s1 + $0xca8] sm:$0xff] }
 0x166   :  { %5469 = vmatpush.bf16.msrb.mxu0 %v8576_v17  ;;  %v5243_v37 = vpop.f32.mrf.mxu2  ;;  %v5219_v40 = vpop.f32.mrf.mxu0  ;;  %v8614_v17 = vld [vmem:[%s10751_s1 + $0xc60] sm:$0xff] }
 0x167   :  { %5482 = vmatpush.bf16.msrb.mxu1 %v8584_v18  ;;  %v5244_v38 = vadd.f32 %v5243_v37, %v5231_v32  ;;  %v5256_v39 = vpop.f32.mrf.mxu3  ;;  %v5232_v44 = vpop.f32.mrf.mxu1  ;;  %v8612_v32 = vld [vmem:[%s10751_s1 + $0xc50] sm:$0xff]  ;;  %v8611_v37 = vld [vmem:[%s10751_s1 + $0xc48] sm:$0xff] }
 0x168   :  { %5495 = vmatpush.bf16.msrb.mxu2 %v8592_v19  ;;  %v8622_v19 = vld [vmem:[%s10751_s1 + $0xca0] sm:$0xff]  ;;  %v8627_v40 = vld [vmem:[%s10751_s1 + $0xcc8] sm:$0xff] }
 0x169   :  { %5508 = vmatpush.bf16.msrb.mxu3 %v8600_v20  ;;  %v10066_v41 = vadd.f32 %v5256_v39, %v5244_v38  ;;  %v8630_v20 = vld [vmem:[%s10751_s1 + $0xce0] sm:$0xff]  ;;  %v28_v38 = vld [vmem:[%s10750_s0 + $0x68] sm:$0xff] }
 0x16a   :  { %5470 = vmatpush.bf16.msrb.mxu0 %v8575_v21  ;;  %v8619_v39 = vld [vmem:[%s10751_s1 + $0xc88] sm:$0xff]  ;;  %113 = vst [vmem:[#allocation1 + $0x20] ss:$4 sm:$0xff] %v28_v38  ;;  %v8610_v44 = vld [vmem:[%s10751_s1 + $0xc40] sm:$0xff] }
 0x16b   :  { %5483 = vmatpush.bf16.msrb.mxu1 %v8583_v22  ;;  %v8605_v22 = vld [vmem:[%s10751_s1 + $0xc18] sm:$0xff] }
 0x16c   :  { %5496 = vmatpush.bf16.msrb.mxu2 %v8591_v23  ;;  %v8613_v23 = vld [vmem:[%s10751_s1 + $0xc58] sm:$0xff] }
 0x16d   :  { %5509 = vmatpush.bf16.msrb.mxu3 %v8599_v24  ;;  %v8621_v24 = vld [vmem:[%s10751_s1 + $0xc98] sm:$0xff] }
 0x16e   :  { %5471 = vmatpush.bf16.msrb.mxu0 %v8574_v27  ;;  %v5245_v52 = vpop.f32.mrf.mxu2 }
 0x16f   :  { %5484 = vmatpush.bf16.msrb.mxu1 %v8582_v28  ;;  %v5258_v53 = vpop.f32.mrf.mxu3  ;;  %v117_v52 = vld.sshfl [vmem:[#allocation1 + $0x18] sm:$0xff pattern:$0x73625140] }
 0x170   :  { %5497 = vmatpush.bf16.msrb.mxu2 %v8590_v30  ;;  %v8657_v53 = vld [vmem:[%s10751_s1 + $0xdb8] sm:$0xff] }
 0x171   :  { %5510 = vmatpush.bf16.msrb.mxu3 %v8598_v31  ;;  %v8604_v31 = vld [vmem:[%s10751_s1 + $0xc10] sm:$0xff]  ;;  %v118_v38 = vld.sshfl [vmem:[#allocation1 + $0x20] sm:$0xff pattern:$0x73625140] }
 0x172   :  { %5472 = vmatpush.bf16.msrb.mxu0 %v8573_v33 }
 0x173   :  { %5485 = vmatpush.bf16.msrb.mxu1 %v8581_v34  ;;  %v8620_v34 = vld [vmem:[%s10751_s1 + $0xc90] sm:$0xff] }
 0x174   :  { %5498 = vmatpush.bf16.msrb.mxu2 %v8589_v35  ;;  %v8628_v35 = vld [vmem:[%s10751_s1 + $0xcd0] sm:$0xff] }
 0x175   :  { %5511 = vmatpush.bf16.msrb.mxu3 %v8597_v36  ;;  %v8603_v36 = vld [vmem:[%s10751_s1 + $0xc08] sm:$0xff] }
 0x176   :  { %5473 = vmatpush.bf16.msrb.mxu0 %v8572_v42 }
 0x177   :  { %5486 = vmatpush.bf16.msrb.mxu1 %v8580_v43  ;;  %v8602_v43 = vld [vmem:[%s10751_s1 + $0xc00] sm:$0xff] }
 0x178   :  { %5499 = vmatpush.bf16.msrb.mxu2 %v8588_v45  ;;  %v8618_v45 = vld [vmem:[%s10751_s1 + $0xc80] sm:$0xff] }
 0x179   :  { %5512 = vmatpush.bf16.msrb.mxu3 %v8596_v46  ;;  %v8626_v46 = vld [vmem:[%s10751_s1 + $0xcc0] sm:$0xff] }
 0x17a   :  { %5474 = vmatpush.bf16.msrb.mxu0 %v8571_v47  ;;  %v8641_v47 = vld [vmem:[%s10751_s1 + $0xd38] sm:$0xff] }
 0x17b   :  { %5487 = vmatpush.bf16.msrb.mxu1 %v8579_v48  ;;  %v8649_v48 = vld [vmem:[%s10751_s1 + $0xd78] sm:$0xff] }
 0x17c   :  { %5500 = vmatpush.bf16.msrb.mxu2 %v8587_v50  ;;  %v116_v50 = vld.sshfl [vmem:[#allocation1 + $0x10] sm:$0xff pattern:$0x73625140] }
 0x17d   :  { %5513 = vmatpush.bf16.msrb.mxu3 %v8595_v51  ;;  %v115_v51 = vld.sshfl [vmem:[#allocation1 + $0x8] sm:$0xff pattern:$0x73625140] }
 0x17e   :  { %5475 = vmatpush.bf16.msrb.mxu0 %v8570_v54  ;;  %v5269_v14 = vpop.f32.mrf.mxu0  ;;  %v8665_v54 = vld [vmem:[%s10751_s1 + $0xdf8] sm:$0xff] }
 0x17f   :  { %5488 = vmatpush.bf16.msrb.mxu1 %v8578_v55  ;;  %v5270_v15 = vadd.f32 %v5269_v14, %v10066_v41  ;;  %v5282_v18 = vpop.f32.mrf.mxu1  ;;  %v262_v55 = vpack.c.bf16 %v114_v49, %v114_v49  ;;  %v8661_v14 = vld [vmem:[%s10751_s1 + $0xdd8] sm:$0xff]  ;;  %v8680_v49 = vld [vmem:[%s10751_s1 + $0xe70] sm:$0xff] }
 0x180   :  { %5501 = vmatpush.bf16.msrb.mxu2 %v8586_v56  ;;  %v264_v56 = vpack.c.bf16 %v116_v50, %v116_v50  ;;  %v8688_v50 = vld [vmem:[%s10751_s1 + $0xeb0] sm:$0xff] }
 0x181   :  { %5514 = vmatpush.bf16.msrb.mxu3 %v8594_v57  ;;  %5476 = vmatmul.bf16.vlgmr.msrb.gmra.mxu0 %v258_v2  ;;  %v5283_v21 = vadd.f32 %v5282_v18, %v5270_v15  ;;  %v263_v57 = vpack.c.bf16 %v115_v51, %v115_v51  ;;  %v8663_v2 = vld [vmem:[%s10751_s1 + $0xde8] sm:$0xff]  ;;  %v8696_v51 = vld [vmem:[%s10751_s1 + $0xef0] sm:$0xff] }
 0x182   :  { %5520 = vmatpush.bf16.msra.mxu0 %v8609_v58  ;;  %5489 = vmatmul.bf16.vlgmr.msrb.gmra.mxu1 %v259_v4  ;;  %v265_v58 = vpack.c.bf16 %v117_v52, %v117_v52  ;;  %v8671_v52 = vld [vmem:[%s10751_s1 + $0xe28] sm:$0xff] }
 0x183   :  { %5533 = vmatpush.bf16.msra.mxu1 %v8617_v59  ;;  %5502 = vmatmul.bf16.vlgmr.msrb.gmra.mxu2 %v260_v3  ;;  %v8640_v59 = vld [vmem:[%s10751_s1 + $0xd30] sm:$0xff] }
 0x184   :  { %5546 = vmatpush.bf16.msra.mxu2 %v8625_v0  ;;  %5515 = vmatmul.bf16.vlgmr.msrb.gmra.mxu3 %v261_v5  ;;  %v8647_v0 = vld [vmem:[%s10751_s1 + $0xd68] sm:$0xff]  ;;  %v8638_v5 = vld [vmem:[%s10751_s1 + $0xd20] sm:$0xff] }
 0x185   :  { %5559 = vmatpush.bf16.msra.mxu3 %v8633_v1  ;;  %v8655_v1 = vld [vmem:[%s10751_s1 + $0xda8] sm:$0xff] }
 0x186   :  { %5521 = vmatpush.bf16.msra.mxu0 %v8608_v6  ;;  %v5295_v26 = vpop.f32.mrf.mxu2  ;;  %v5271_v29 = vpop.f32.mrf.mxu0  ;;  %v8646_v6 = vld [vmem:[%s10751_s1 + $0xd60] sm:$0xff] }
 0x187   :  { %5534 = vmatpush.bf16.msra.mxu1 %v8616_v7  ;;  %v5296_v27 = vadd.f32 %v5295_v26, %v5283_v21  ;;  %v5308_v28 = vpop.f32.mrf.mxu3  ;;  %v5284_v33 = vpop.f32.mrf.mxu1  ;;  %v8644_v21 = vld [vmem:[%s10751_s1 + $0xd50] sm:$0xff]  ;;  %v8643_v26 = vld [vmem:[%s10751_s1 + $0xd48] sm:$0xff] }
 0x188   :  { %5547 = vmatpush.bf16.msra.mxu2 %v8624_v8  ;;  %v8654_v8 = vld [vmem:[%s10751_s1 + $0xda0] sm:$0xff]  ;;  %v8659_v29 = vld [vmem:[%s10751_s1 + $0xdc8] sm:$0xff] }
 0x189   :  { %5560 = vmatpush.bf16.msra.mxu3 %v8632_v9  ;;  %v10168_v30 = vadd.f32 %v5308_v28, %v5296_v27  ;;  %v8662_v9 = vld [vmem:[%s10751_s1 + $0xde0] sm:$0xff]  ;;  %v29_v27 = vld [vmem:[%s10750_s0 + $0x70] sm:$0xff]  ;;  %v8651_v28 = vld [vmem:[%s10751_s1 + $0xd88] sm:$0xff] }
 0x18a   :  { %5522 = vmatpush.bf16.msra.mxu0 %v8607_v10  ;;  %122 = vst [vmem:[#allocation1] ss:$4 sm:$0xff] %v29_v27  ;;  %v8642_v33 = vld [vmem:[%s10751_s1 + $0xd40] sm:$0xff] }
 0x18b   :  { %5535 = vmatpush.bf16.msra.mxu1 %v8615_v11  ;;  %v8637_v11 = vld [vmem:[%s10751_s1 + $0xd18] sm:$0xff] }
 0x18c   :  { %5548 = vmatpush.bf16.msra.mxu2 %v8623_v12  ;;  %v8645_v12 = vld [vmem:[%s10751_s1 + $0xd58] sm:$0xff] }
 0x18d   :  { %5561 = vmatpush.bf16.msra.mxu3 %v8631_v13  ;;  %v8653_v13 = vld [vmem:[%s10751_s1 + $0xd98] sm:$0xff] }
 0x18e   :  { %5523 = vmatpush.bf16.msra.mxu0 %v8606_v16  ;;  %v5297_v41 = vpop.f32.mrf.mxu2 }
 0x18f   :  { %5536 = vmatpush.bf16.msra.mxu1 %v8614_v17  ;;  %v5310_v42 = vpop.f32.mrf.mxu3  ;;  %v121_v41 = vld.sshfl [vmem:[#allocation1 + $0x38] sm:$0xff pattern:$0x73625140] }
 0x190   :  { %5549 = vmatpush.bf16.msra.mxu2 %v8622_v19  ;;  %v8689_v42 = vld [vmem:[%s10751_s1 + $0xeb8] sm:$0xff] }
 0x191   :  { %5562 = vmatpush.bf16.msra.mxu3 %v8630_v20  ;;  %v8636_v20 = vld [vmem:[%s10751_s1 + $0xd10] sm:$0xff]  ;;  %v124_v27 = vld.sshfl [vmem:[#allocation1] sm:$0xff pattern:$0x73625140] }
 0x192   :  { %5524 = vmatpush.bf16.msra.mxu0 %v8605_v22 }
 0x193   :  { %5537 = vmatpush.bf16.msra.mxu1 %v8613_v23  ;;  %v8652_v23 = vld [vmem:[%s10751_s1 + $0xd90] sm:$0xff] }
 0x194   :  { %5550 = vmatpush.bf16.msra.mxu2 %v8621_v24  ;;  %v8660_v24 = vld [vmem:[%s10751_s1 + $0xdd0] sm:$0xff] }
 0x195   :  { %5563 = vmatpush.bf16.msra.mxu3 %v8629_v25  ;;  %v8635_v25 = vld [vmem:[%s10751_s1 + $0xd08] sm:$0xff] }
 0x196   :  { %5525 = vmatpush.bf16.msra.mxu0 %v8604_v31 }
 0x197   :  { %5538 = vmatpush.bf16.msra.mxu1 %v8612_v32  ;;  %v8634_v32 = vld [vmem:[%s10751_s1 + $0xd00] sm:$0xff] }
 0x198   :  { %5551 = vmatpush.bf16.msra.mxu2 %v8620_v34  ;;  %v8650_v34 = vld [vmem:[%s10751_s1 + $0xd80] sm:$0xff] }
 0x199   :  { %5564 = vmatpush.bf16.msra.mxu3 %v8628_v35  ;;  %v8658_v35 = vld [vmem:[%s10751_s1 + $0xdc0] sm:$0xff] }
 0x19a   :  { %5526 = vmatpush.bf16.msra.mxu0 %v8603_v36  ;;  %v8673_v36 = vld [vmem:[%s10751_s1 + $0xe38] sm:$0xff] }
 0x19b   :  { %5539 = vmatpush.bf16.msra.mxu1 %v8611_v37  ;;  %v8681_v37 = vld [vmem:[%s10751_s1 + $0xe78] sm:$0xff] }
 0x19c   :  { %5552 = vmatpush.bf16.msra.mxu2 %v8619_v39  ;;  %v120_v39 = vld.sshfl [vmem:[#allocation1 + $0x30] sm:$0xff pattern:$0x73625140] }
 0x19d   :  { %5565 = vmatpush.bf16.msra.mxu3 %v8627_v40  ;;  %v119_v40 = vld.sshfl [vmem:[#allocation1 + $0x28] sm:$0xff pattern:$0x73625140] }
 0x19e   :  { %5527 = vmatpush.bf16.msra.mxu0 %v8602_v43  ;;  %v5321_v3 = vpop.f32.mrf.mxu0  ;;  %v8697_v43 = vld [vmem:[%s10751_s1 + $0xef8] sm:$0xff] }
 0x19f   :  { %5540 = vmatpush.bf16.msra.mxu1 %v8610_v44  ;;  %v5322_v4 = vadd.f32 %v5321_v3, %v10168_v30  ;;  %v5334_v7 = vpop.f32.mrf.mxu1  ;;  %v266_v44 = vpack.c.bf16 %v118_v38, %v118_v38  ;;  %v8693_v3 = vld [vmem:[%s10751_s1 + $0xed8] sm:$0xff]  ;;  %v8712_v38 = vld [vmem:[%s10751_s1 + $0xf70] sm:$0xff] }
 0x1a0   :  { %5553 = vmatpush.bf16.msra.mxu2 %v8618_v45  ;;  %v268_v45 = vpack.c.bf16 %v120_v39, %v120_v39  ;;  %v8720_v39 = vld [vmem:[%s10751_s1 + $0xfb0] sm:$0xff] }
 0x1a1   :  { %5566 = vmatpush.bf16.msra.mxu3 %v8626_v46  ;;  %5528 = vmatmul.bf16.vlgmr.msra.gmra.mxu0 %v262_v55  ;;  %v5335_v10 = vadd.f32 %v5334_v7, %v5322_v4  ;;  %v267_v46 = vpack.c.bf16 %v119_v40, %v119_v40  ;;  %v8695_v55 = vld [vmem:[%s10751_s1 + $0xee8] sm:$0xff]  ;;  %v8728_v40 = vld [vmem:[%s10751_s1 + $0xff0] sm:$0xff] }
 0x1a2   :  { %5572 = vmatpush.bf16.msrb.mxu0 %v8641_v47  ;;  %5541 = vmatmul.bf16.vlgmr.msra.gmra.mxu1 %v263_v57  ;;  %v269_v47 = vpack.c.bf16 %v121_v41, %v121_v41  ;;  %v8703_v41 = vld [vmem:[%s10751_s1 + $0xf28] sm:$0xff] }
 0x1a3   :  { %5585 = vmatpush.bf16.msrb.mxu1 %v8649_v48  ;;  %5554 = vmatmul.bf16.vlgmr.msra.gmra.mxu2 %v264_v56  ;;  %v8672_v48 = vld [vmem:[%s10751_s1 + $0xe30] sm:$0xff] }
 0x1a4   :  { %5598 = vmatpush.bf16.msrb.mxu2 %v8657_v53  ;;  %5567 = vmatmul.bf16.vlgmr.msra.gmra.mxu3 %v265_v58  ;;  %v8679_v53 = vld [vmem:[%s10751_s1 + $0xe68] sm:$0xff]  ;;  %v8670_v58 = vld [vmem:[%s10751_s1 + $0xe20] sm:$0xff] }
 0x1a5   :  { %5611 = vmatpush.bf16.msrb.mxu3 %v8665_v54  ;;  %v8687_v54 = vld [vmem:[%s10751_s1 + $0xea8] sm:$0xff] }
 0x1a6   :  { %5573 = vmatpush.bf16.msrb.mxu0 %v8640_v59  ;;  %v5347_v15 = vpop.f32.mrf.mxu2  ;;  %v5323_v18 = vpop.f32.mrf.mxu0  ;;  %v8678_v59 = vld [vmem:[%s10751_s1 + $0xe60] sm:$0xff] }
 0x1a7   :  { %5586 = vmatpush.bf16.msrb.mxu1 %v8648_v60  ;;  %v5348_v16 = vadd.f32 %v5347_v15, %v5335_v10  ;;  %v5360_v17 = vpop.f32.mrf.mxu3  ;;  %v5336_v22 = vpop.f32.mrf.mxu1  ;;  %v8676_v10 = vld [vmem:[%s10751_s1 + $0xe50] sm:$0xff]  ;;  %v8675_v15 = vld [vmem:[%s10751_s1 + $0xe48] sm:$0xff] }
 0x1a8   :  { %5599 = vmatpush.bf16.msrb.mxu2 %v8656_v61  ;;  %v8686_v61 = vld [vmem:[%s10751_s1 + $0xea0] sm:$0xff]  ;;  %v8691_v18 = vld [vmem:[%s10751_s1 + $0xec8] sm:$0xff] }
 0x1a9   :  { %5612 = vmatpush.bf16.msrb.mxu3 %v8664_v62  ;;  %v10270_v19 = vadd.f32 %v5360_v17, %v5348_v16  ;;  %v8694_v62 = vld [vmem:[%s10751_s1 + $0xee0] sm:$0xff]  ;;  %v30_v16 = vld [vmem:[%s10750_s0 + $0x78] sm:$0xff]  ;;  %v8683_v17 = vld [vmem:[%s10751_s1 + $0xe88] sm:$0xff] }
 0x1aa   :  { %5574 = vmatpush.bf16.msrb.mxu0 %v8639_v63  ;;  %123 = vst [vmem:[#allocation1 + $0x20] ss:$4 sm:$0xff] %v30_v16  ;;  %v8674_v22 = vld [vmem:[%s10751_s1 + $0xe40] sm:$0xff] }
 0x1ab   :  { %5587 = vmatpush.bf16.msrb.mxu1 %v8647_v0  ;;  %v8669_v0 = vld [vmem:[%s10751_s1 + $0xe18] sm:$0xff] }
 0x1ac   :  { %5600 = vmatpush.bf16.msrb.mxu2 %v8655_v1  ;;  %v8677_v1 = vld [vmem:[%s10751_s1 + $0xe58] sm:$0xff] }
 0x1ad   :  { %5613 = vmatpush.bf16.msrb.mxu3 %v8663_v2  ;;  %v8685_v2 = vld [vmem:[%s10751_s1 + $0xe98] sm:$0xff] }
 0x1ae   :  { %5575 = vmatpush.bf16.msrb.mxu0 %v8638_v5  ;;  %v5349_v30 = vpop.f32.mrf.mxu2 }
 0x1af   :  { %5588 = vmatpush.bf16.msrb.mxu1 %v8646_v6  ;;  %v5362_v31 = vpop.f32.mrf.mxu3  ;;  %v127_v30 = vld.sshfl [vmem:[#allocation1 + $0x18] sm:$0xff pattern:$0x73625140] }
 0x1b0   :  { %5601 = vmatpush.bf16.msrb.mxu2 %v8654_v8  ;;  %v8721_v31 = vld [vmem:[%s10751_s1 + $0xfb8] sm:$0xff] }
 0x1b1   :  { %5614 = vmatpush.bf16.msrb.mxu3 %v8662_v9  ;;  %v8668_v9 = vld [vmem:[%s10751_s1 + $0xe10] sm:$0xff]  ;;  %v128_v16 = vld.sshfl [vmem:[#allocation1 + $0x20] sm:$0xff pattern:$0x73625140] }
 0x1b2   :  { %5576 = vmatpush.bf16.msrb.mxu0 %v8637_v11 }
 0x1b3   :  { %5589 = vmatpush.bf16.msrb.mxu1 %v8645_v12  ;;  %v8684_v12 = vld [vmem:[%s10751_s1 + $0xe90] sm:$0xff] }
 0x1b4   :  { %5602 = vmatpush.bf16.msrb.mxu2 %v8653_v13  ;;  %v8692_v13 = vld [vmem:[%s10751_s1 + $0xed0] sm:$0xff] }
 0x1b5   :  { %5615 = vmatpush.bf16.msrb.mxu3 %v8661_v14  ;;  %v8667_v14 = vld [vmem:[%s10751_s1 + $0xe08] sm:$0xff] }
 0x1b6   :  { %5577 = vmatpush.bf16.msrb.mxu0 %v8636_v20 }
 0x1b7   :  { %5590 = vmatpush.bf16.msrb.mxu1 %v8644_v21  ;;  %v8666_v21 = vld [vmem:[%s10751_s1 + $0xe00] sm:$0xff] }
 0x1b8   :  { %5603 = vmatpush.bf16.msrb.mxu2 %v8652_v23  ;;  %v8682_v23 = vld [vmem:[%s10751_s1 + $0xe80] sm:$0xff] }
 0x1b9   :  { %5616 = vmatpush.bf16.msrb.mxu3 %v8660_v24  ;;  %v8690_v24 = vld [vmem:[%s10751_s1 + $0xec0] sm:$0xff] }
 0x1ba   :  { %5578 = vmatpush.bf16.msrb.mxu0 %v8635_v25  ;;  %v8705_v25 = vld [vmem:[%s10751_s1 + $0xf38] sm:$0xff] }
 0x1bb   :  { %5591 = vmatpush.bf16.msrb.mxu1 %v8643_v26  ;;  %v8713_v26 = vld [vmem:[%s10751_s1 + $0xf78] sm:$0xff] }
 0x1bc   :  { %5604 = vmatpush.bf16.msrb.mxu2 %v8651_v28  ;;  %v126_v28 = vld.sshfl [vmem:[#allocation1 + $0x10] sm:$0xff pattern:$0x73625140] }
 0x1bd   :  { %5617 = vmatpush.bf16.msrb.mxu3 %v8659_v29  ;;  %v125_v29 = vld.sshfl [vmem:[#allocation1 + $0x8] sm:$0xff pattern:$0x73625140] }
 0x1be   :  { %5579 = vmatpush.bf16.msrb.mxu0 %v8634_v32  ;;  %v5373_v56 = vpop.f32.mrf.mxu0  ;;  %v8729_v32 = vld [vmem:[%s10751_s1 + $0xff8] sm:$0xff] }
 0x1bf   :  { %5592 = vmatpush.bf16.msrb.mxu1 %v8642_v33  ;;  %v5374_v57 = vadd.f32 %v5373_v56, %v10270_v19  ;;  %v5386_v60 = vpop.f32.mrf.mxu1  ;;  %v270_v33 = vpack.c.bf16 %v124_v27, %v124_v27  ;;  %v8725_v56 = vld [vmem:[%s10751_s1 + $0xfd8] sm:$0xff]  ;;  %v8744_v27 = vld [vmem:[%s10751_s1 + $0x1070] sm:$0xff] }
 0x1c0   :  { %5605 = vmatpush.bf16.msrb.mxu2 %v8650_v34  ;;  %v272_v34 = vpack.c.bf16 %v126_v28, %v126_v28  ;;  %v8752_v28 = vld [vmem:[%s10751_s1 + $0x10b0] sm:$0xff] }
 0x1c1   :  { %5618 = vmatpush.bf16.msrb.mxu3 %v8658_v35  ;;  %5580 = vmatmul.bf16.vlgmr.msrb.gmra.mxu0 %v266_v44  ;;  %v5387_v63 = vadd.f32 %v5386_v60, %v5374_v57  ;;  %v271_v35 = vpack.c.bf16 %v125_v29, %v125_v29  ;;  %v8727_v44 = vld [vmem:[%s10751_s1 + $0xfe8] sm:$0xff]  ;;  %v8760_v29 = vld [vmem:[%s10751_s1 + $0x10f0] sm:$0xff] }
 0x1c2   :  { %5624 = vmatpush.bf16.msra.mxu0 %v8673_v36  ;;  %5593 = vmatmul.bf16.vlgmr.msrb.gmra.mxu1 %v267_v46  ;;  %v273_v36 = vpack.c.bf16 %v127_v30, %v127_v30  ;;  %v8735_v30 = vld [vmem:[%s10751_s1 + $0x1028] sm:$0xff] }
 0x1c3   :  { %5637 = vmatpush.bf16.msra.mxu1 %v8681_v37  ;;  %5606 = vmatmul.bf16.vlgmr.msrb.gmra.mxu2 %v268_v45  ;;  %v8704_v37 = vld [vmem:[%s10751_s1 + $0xf30] sm:$0xff] }
 0x1c4   :  { %5650 = vmatpush.bf16.msra.mxu2 %v8689_v42  ;;  %5619 = vmatmul.bf16.vlgmr.msrb.gmra.mxu3 %v269_v47  ;;  %v8711_v42 = vld [vmem:[%s10751_s1 + $0xf68] sm:$0xff]  ;;  %v8702_v47 = vld [vmem:[%s10751_s1 + $0xf20] sm:$0xff] }
 0x1c5   :  { %5663 = vmatpush.bf16.msra.mxu3 %v8697_v43  ;;  %v8719_v43 = vld [vmem:[%s10751_s1 + $0xfa8] sm:$0xff] }
 0x1c6   :  { %5625 = vmatpush.bf16.msra.mxu0 %v8672_v48  ;;  %v5399_v4 = vpop.f32.mrf.mxu2  ;;  %v5375_v7 = vpop.f32.mrf.mxu0  ;;  %v8710_v48 = vld [vmem:[%s10751_s1 + $0xf60] sm:$0xff] }
 0x1c7   :  { %5638 = vmatpush.bf16.msra.mxu1 %v8680_v49  ;;  %v5400_v5 = vadd.f32 %v5399_v4, %v5387_v63  ;;  %v5412_v6 = vpop.f32.mrf.mxu3  ;;  %v5388_v11 = vpop.f32.mrf.mxu1  ;;  %v8708_v63 = vld [vmem:[%s10751_s1 + $0xf50] sm:$0xff]  ;;  %v8707_v4 = vld [vmem:[%s10751_s1 + $0xf48] sm:$0xff] }
 0x1c8   :  { %5651 = vmatpush.bf16.msra.mxu2 %v8688_v50  ;;  %v8718_v50 = vld [vmem:[%s10751_s1 + $0xfa0] sm:$0xff]  ;;  %v8723_v7 = vld [vmem:[%s10751_s1 + $0xfc8] sm:$0xff] }
 0x1c9   :  { %5664 = vmatpush.bf16.msra.mxu3 %v8696_v51  ;;  %v10372_v8 = vadd.f32 %v5412_v6, %v5400_v5  ;;  %v8726_v51 = vld [vmem:[%s10751_s1 + $0xfe0] sm:$0xff]  ;;  %v8715_v6 = vld [vmem:[%s10751_s1 + $0xf88] sm:$0xff] }
 0x1ca   :  { %5626 = vmatpush.bf16.msra.mxu0 %v8671_v52  ;;  %v31_v5 = vld [vmem:[%s10750_s0 + $0x80] sm:$0xff] }
 0x1cb   :  { %5639 = vmatpush.bf16.msra.mxu1 %v8679_v53  ;;  %v8701_v53 = vld [vmem:[%s10751_s1 + $0xf18] sm:$0xff]  ;;  %132 = vst [vmem:[#allocation1] ss:$4 sm:$0xff] %v31_v5  ;;  %v8706_v11 = vld [vmem:[%s10751_s1 + $0xf40] sm:$0xff] }
 0x1cc   :  { %5652 = vmatpush.bf16.msra.mxu2 %v8687_v54  ;;  %v8709_v54 = vld [vmem:[%s10751_s1 + $0xf58] sm:$0xff] }
 0x1cd   :  { %5665 = vmatpush.bf16.msra.mxu3 %v8695_v55  ;;  %v8717_v55 = vld [vmem:[%s10751_s1 + $0xf98] sm:$0xff] }
 0x1ce   :  { %5627 = vmatpush.bf16.msra.mxu0 %v8670_v58  ;;  %v5401_v19 = vpop.f32.mrf.mxu2 }
 0x1cf   :  { %5640 = vmatpush.bf16.msra.mxu1 %v8678_v59  ;;  %v5414_v20 = vpop.f32.mrf.mxu3  ;;  %v131_v19 = vld.sshfl [vmem:[#allocation1 + $0x38] sm:$0xff pattern:$0x73625140] }
 0x1d0   :  { %5653 = vmatpush.bf16.msra.mxu2 %v8686_v61  ;;  %v8753_v20 = vld [vmem:[%s10751_s1 + $0x10b8] sm:$0xff] }
 0x1d1   :  { %5666 = vmatpush.bf16.msra.mxu3 %v8694_v62  ;;  %v8700_v62 = vld [vmem:[%s10751_s1 + $0xf10] sm:$0xff] }
 0x1d2   :  { %5628 = vmatpush.bf16.msra.mxu0 %v8669_v0  ;;  %v134_v5 = vld.sshfl [vmem:[#allocation1] sm:$0xff pattern:$0x73625140] }
 0x1d3   :  { %5641 = vmatpush.bf16.msra.mxu1 %v8677_v1  ;;  %v8716_v1 = vld [vmem:[%s10751_s1 + $0xf90] sm:$0xff] }
 0x1d4   :  { %5654 = vmatpush.bf16.msra.mxu2 %v8685_v2  ;;  %v8724_v2 = vld [vmem:[%s10751_s1 + $0xfd0] sm:$0xff] }
 0x1d5   :  { %5667 = vmatpush.bf16.msra.mxu3 %v8693_v3  ;;  %v8699_v3 = vld [vmem:[%s10751_s1 + $0xf08] sm:$0xff] }
 0x1d6   :  { %5629 = vmatpush.bf16.msra.mxu0 %v8668_v9 }
 0x1d7   :  { %5642 = vmatpush.bf16.msra.mxu1 %v8676_v10  ;;  %v8698_v10 = vld [vmem:[%s10751_s1 + $0xf00] sm:$0xff] }
 0x1d8   :  { %5655 = vmatpush.bf16.msra.mxu2 %v8684_v12  ;;  %v8714_v12 = vld [vmem:[%s10751_s1 + $0xf80] sm:$0xff] }
 0x1d9   :  { %5668 = vmatpush.bf16.msra.mxu3 %v8692_v13  ;;  %v8722_v13 = vld [vmem:[%s10751_s1 + $0xfc0] sm:$0xff] }
 0x1da   :  { %5630 = vmatpush.bf16.msra.mxu0 %v8667_v14  ;;  %v8737_v14 = vld [vmem:[%s10751_s1 + $0x1038] sm:$0xff] }
 0x1db   :  { %5643 = vmatpush.bf16.msra.mxu1 %v8675_v15  ;;  %v8745_v15 = vld [vmem:[%s10751_s1 + $0x1078] sm:$0xff] }
 0x1dc   :  { %5656 = vmatpush.bf16.msra.mxu2 %v8683_v17  ;;  %v130_v17 = vld.sshfl [vmem:[#allocation1 + $0x30] sm:$0xff pattern:$0x73625140] }
 0x1dd   :  { %5669 = vmatpush.bf16.msra.mxu3 %v8691_v18  ;;  %v129_v18 = vld.sshfl [vmem:[#allocation1 + $0x28] sm:$0xff pattern:$0x73625140] }
 0x1de   :  { %5631 = vmatpush.bf16.msra.mxu0 %v8666_v21  ;;  %v5425_v45 = vpop.f32.mrf.mxu0  ;;  %v8761_v21 = vld [vmem:[%s10751_s1 + $0x10f8] sm:$0xff] }
 0x1df   :  { %5644 = vmatpush.bf16.msra.mxu1 %v8674_v22  ;;  %v5426_v46 = vadd.f32 %v5425_v45, %v10372_v8  ;;  %v5438_v49 = vpop.f32.mrf.mxu1  ;;  %v274_v22 = vpack.c.bf16 %v128_v16, %v128_v16  ;;  %v8757_v45 = vld [vmem:[%s10751_s1 + $0x10d8] sm:$0xff]  ;;  %v8776_v16 = vld [vmem:[%s10751_s1 + $0x1170] sm:$0xff] }
 0x1e0   :  { %5657 = vmatpush.bf16.msra.mxu2 %v8682_v23  ;;  %v276_v23 = vpack.c.bf16 %v130_v17, %v130_v17  ;;  %v8784_v17 = vld [vmem:[%s10751_s1 + $0x11b0] sm:$0xff] }
 0x1e1   :  { %5670 = vmatpush.bf16.msra.mxu3 %v8690_v24  ;;  %5632 = vmatmul.bf16.vlgmr.msra.gmra.mxu0 %v270_v33  ;;  %v5439_v52 = vadd.f32 %v5438_v49, %v5426_v46  ;;  %v275_v24 = vpack.c.bf16 %v129_v18, %v129_v18  ;;  %v8759_v33 = vld [vmem:[%s10751_s1 + $0x10e8] sm:$0xff]  ;;  %v8792_v18 = vld [vmem:[%s10751_s1 + $0x11f0] sm:$0xff] }
 0x1e2   :  { %5676 = vmatpush.bf16.msrb.mxu0 %v8705_v25  ;;  %5645 = vmatmul.bf16.vlgmr.msra.gmra.mxu1 %v271_v35  ;;  %v277_v25 = vpack.c.bf16 %v131_v19, %v131_v19  ;;  %v8767_v19 = vld [vmem:[%s10751_s1 + $0x1128] sm:$0xff] }
 0x1e3   :  { %5689 = vmatpush.bf16.msrb.mxu1 %v8713_v26  ;;  %5658 = vmatmul.bf16.vlgmr.msra.gmra.mxu2 %v272_v34  ;;  %v8736_v26 = vld [vmem:[%s10751_s1 + $0x1030] sm:$0xff] }
 0x1e4   :  { %5702 = vmatpush.bf16.msrb.mxu2 %v8721_v31  ;;  %5671 = vmatmul.bf16.vlgmr.msra.gmra.mxu3 %v273_v36  ;;  %v8743_v31 = vld [vmem:[%s10751_s1 + $0x1068] sm:$0xff]  ;;  %v8734_v36 = vld [vmem:[%s10751_s1 + $0x1020] sm:$0xff] }
 0x1e5   :  { %5715 = vmatpush.bf16.msrb.mxu3 %v8729_v32  ;;  %v8751_v32 = vld [vmem:[%s10751_s1 + $0x10a8] sm:$0xff] }
 0x1e6   :  { %5677 = vmatpush.bf16.msrb.mxu0 %v8704_v37  ;;  %v5451_v57 = vpop.f32.mrf.mxu2  ;;  %v5427_v60 = vpop.f32.mrf.mxu0  ;;  %v8742_v37 = vld [vmem:[%s10751_s1 + $0x1060] sm:$0xff] }
 0x1e7   :  { %5690 = vmatpush.bf16.msrb.mxu1 %v8712_v38  ;;  %v5452_v58 = vadd.f32 %v5451_v57, %v5439_v52  ;;  %v5464_v59 = vpop.f32.mrf.mxu3  ;;  %v5440_v0 = vpop.f32.mrf.mxu1  ;;  %v8740_v52 = vld [vmem:[%s10751_s1 + $0x1050] sm:$0xff]  ;;  %v8731_v57 = vld [vmem:[%s10751_s1 + $0x1008] sm:$0xff] }
 0x1e8   :  { %5703 = vmatpush.bf16.msrb.mxu2 %v8720_v39  ;;  %v8750_v39 = vld [vmem:[%s10751_s1 + $0x10a0] sm:$0xff]  ;;  %v8755_v60 = vld [vmem:[%s10751_s1 + $0x10c8] sm:$0xff] }
 0x1e9   :  { %5716 = vmatpush.bf16.msrb.mxu3 %v8728_v40  ;;  %v10474_v61 = vadd.f32 %v5464_v59, %v5452_v58  ;;  %v8758_v40 = vld [vmem:[%s10751_s1 + $0x10e0] sm:$0xff]  ;;  %v8739_v58 = vld [vmem:[%s10751_s1 + $0x1048] sm:$0xff] }
 0x1ea   :  { %5678 = vmatpush.bf16.msrb.mxu0 %v8703_v41  ;;  %v8747_v59 = vld [vmem:[%s10751_s1 + $0x1088] sm:$0xff]  ;;  %v8738_v0 = vld [vmem:[%s10751_s1 + $0x1040] sm:$0xff] }
 0x1eb   :  { %5691 = vmatpush.bf16.msrb.mxu1 %v8711_v42  ;;  %v8733_v42 = vld [vmem:[%s10751_s1 + $0x1018] sm:$0xff] }
 0x1ec   :  { %5704 = vmatpush.bf16.msrb.mxu2 %v8719_v43  ;;  %v8741_v43 = vld [vmem:[%s10751_s1 + $0x1058] sm:$0xff] }
 0x1ed   :  { %5717 = vmatpush.bf16.msrb.mxu3 %v8727_v44  ;;  %v8749_v44 = vld [vmem:[%s10751_s1 + $0x1098] sm:$0xff] }
 0x1ee   :  { %5679 = vmatpush.bf16.msrb.mxu0 %v8702_v47  ;;  %v5453_v8 = vpop.f32.mrf.mxu2 }
 0x1ef   :  { %5692 = vmatpush.bf16.msrb.mxu1 %v8710_v48  ;;  %v5466_v9 = vpop.f32.mrf.mxu3  ;;  %v137_v8 = vld.sshfl [vmem:[#allocation1 + $0x18] sm:$0xff pattern:$0x73625140] }
 0x1f0   :  { %5705 = vmatpush.bf16.msrb.mxu2 %v8718_v50  ;;  %v8785_v9 = vld [vmem:[%s10751_s1 + $0x11b8] sm:$0xff] }
 0x1f1   :  { %5718 = vmatpush.bf16.msrb.mxu3 %v8726_v51  ;;  %v8732_v51 = vld [vmem:[%s10751_s1 + $0x1010] sm:$0xff] }
 0x1f2   :  { %5680 = vmatpush.bf16.msrb.mxu0 %v8701_v53 }
 0x1f3   :  { %5693 = vmatpush.bf16.msrb.mxu1 %v8709_v54  ;;  %v8748_v54 = vld [vmem:[%s10751_s1 + $0x1090] sm:$0xff] }
 0x1f4   :  { %5706 = vmatpush.bf16.msrb.mxu2 %v8717_v55  ;;  %v8756_v55 = vld [vmem:[%s10751_s1 + $0x10d0] sm:$0xff] }
 0x1f5   :  { %5719 = vmatpush.bf16.msrb.mxu3 %v8725_v56  ;;  %v32_v56 = vld [vmem:[%s10750_s0 + $0x88] sm:$0xff] }
 0x1f6   :  { %5681 = vmatpush.bf16.msrb.mxu0 %v8700_v62  ;;  %133 = vst [vmem:[#allocation1 + $0x20] ss:$4 sm:$0xff] %v32_v56 }
 0x1f7   :  { %5694 = vmatpush.bf16.msrb.mxu1 %v8708_v63  ;;  %v8730_v63 = vld [vmem:[%s10751_s1 + $0x1000] sm:$0xff] }
 0x1f8   :  { %5707 = vmatpush.bf16.msrb.mxu2 %v8716_v1  ;;  %v8746_v1 = vld [vmem:[%s10751_s1 + $0x1080] sm:$0xff] }
 0x1f9   :  { %5720 = vmatpush.bf16.msrb.mxu3 %v8724_v2  ;;  %v8754_v2 = vld [vmem:[%s10751_s1 + $0x10c0] sm:$0xff] }
 0x1fa   :  { %5682 = vmatpush.bf16.msrb.mxu0 %v8699_v3  ;;  %v8769_v3 = vld [vmem:[%s10751_s1 + $0x1138] sm:$0xff] }
 0x1fb   :  { %5695 = vmatpush.bf16.msrb.mxu1 %v8707_v4  ;;  %v8777_v4 = vld [vmem:[%s10751_s1 + $0x1178] sm:$0xff] }
 0x1fc   :  { %5708 = vmatpush.bf16.msrb.mxu2 %v8715_v6  ;;  %v136_v6 = vld.sshfl [vmem:[#allocation1 + $0x10] sm:$0xff pattern:$0x73625140] }
 0x1fd   :  { %5721 = vmatpush.bf16.msrb.mxu3 %v8723_v7  ;;  %v135_v7 = vld.sshfl [vmem:[#allocation1 + $0x8] sm:$0xff pattern:$0x73625140] }
 0x1fe   :  { %5683 = vmatpush.bf16.msrb.mxu0 %v8698_v10  ;;  %v5477_v34 = vpop.f32.mrf.mxu0  ;;  %v8793_v10 = vld [vmem:[%s10751_s1 + $0x11f8] sm:$0xff]  ;;  %v139_v56 = vld.sshfl [vmem:[#allocation1 + $0x28] sm:$0xff pattern:$0x73625140] }
 0x1ff   :  { %5696 = vmatpush.bf16.msrb.mxu1 %v8706_v11  ;;  %v5478_v35 = vadd.f32 %v5477_v34, %v10474_v61  ;;  %v5490_v38 = vpop.f32.mrf.mxu1  ;;  %v278_v11 = vpack.c.bf16 %v134_v5, %v134_v5  ;;  %v8789_v34 = vld [vmem:[%s10751_s1 + $0x11d8] sm:$0xff] }
 0x200   :  { %5709 = vmatpush.bf16.msrb.mxu2 %v8714_v12  ;;  %v280_v12 = vpack.c.bf16 %v136_v6, %v136_v6 }
 0x201   :  { %5722 = vmatpush.bf16.msrb.mxu3 %v8722_v13  ;;  %5684 = vmatmul.bf16.vlgmr.msrb.gmra.mxu0 %v274_v22  ;;  %v5491_v41 = vadd.f32 %v5490_v38, %v5478_v35  ;;  %v279_v13 = vpack.c.bf16 %v135_v7, %v135_v7  ;;  %v8791_v22 = vld [vmem:[%s10751_s1 + $0x11e8] sm:$0xff] }
 0x202   :  { %5728 = vmatpush.bf16.msra.mxu0 %v8737_v14  ;;  %5697 = vmatmul.bf16.vlgmr.msrb.gmra.mxu1 %v275_v24  ;;  %v281_v14 = vpack.c.bf16 %v137_v8, %v137_v8 }
 0x203   :  { %5741 = vmatpush.bf16.msra.mxu1 %v8745_v15  ;;  %5710 = vmatmul.bf16.vlgmr.msrb.gmra.mxu2 %v276_v23  ;;  %v8768_v15 = vld [vmem:[%s10751_s1 + $0x1130] sm:$0xff] }
 0x204   :  { %5754 = vmatpush.bf16.msra.mxu2 %v8753_v20  ;;  %5723 = vmatmul.bf16.vlgmr.msrb.gmra.mxu3 %v277_v25  ;;  %v8775_v20 = vld [vmem:[%s10751_s1 + $0x1168] sm:$0xff]  ;;  %v8766_v25 = vld [vmem:[%s10751_s1 + $0x1120] sm:$0xff] }
 0x205   :  { %5767 = vmatpush.bf16.msra.mxu3 %v8761_v21  ;;  %v8783_v21 = vld [vmem:[%s10751_s1 + $0x11a8] sm:$0xff] }
 0x206   :  { %5729 = vmatpush.bf16.msra.mxu0 %v8736_v26  ;;  %v5503_v46 = vpop.f32.mrf.mxu2  ;;  %v5479_v49 = vpop.f32.mrf.mxu0  ;;  %v8774_v26 = vld [vmem:[%s10751_s1 + $0x1160] sm:$0xff] }
 0x207   :  { %5742 = vmatpush.bf16.msra.mxu1 %v8744_v27  ;;  %v5504_v47 = vadd.f32 %v5503_v46, %v5491_v41  ;;  %v5516_v48 = vpop.f32.mrf.mxu3  ;;  %v5492_v53 = vpop.f32.mrf.mxu1  ;;  %v8772_v41 = vld [vmem:[%s10751_s1 + $0x1150] sm:$0xff]  ;;  %v8771_v46 = vld [vmem:[%s10751_s1 + $0x1148] sm:$0xff] }
 0x208   :  { %5755 = vmatpush.bf16.msra.mxu2 %v8752_v28  ;;  %v8782_v28 = vld [vmem:[%s10751_s1 + $0x11a0] sm:$0xff] }
 0x209   :  { %5768 = vmatpush.bf16.msra.mxu3 %v8760_v29  ;;  %v10576_v50 = vadd.f32 %v5516_v48, %v5504_v47  ;;  %v8790_v29 = vld [vmem:[%s10751_s1 + $0x11e0] sm:$0xff]  ;;  %v8779_v47 = vld [vmem:[%s10751_s1 + $0x1188] sm:$0xff] }
 0x20a   :  { %5730 = vmatpush.bf16.msra.mxu0 %v8735_v30  ;;  %v8787_v48 = vld [vmem:[%s10751_s1 + $0x11c8] sm:$0xff]  ;;  %v8778_v53 = vld [vmem:[%s10751_s1 + $0x1180] sm:$0xff] }
 0x20b   :  { %5743 = vmatpush.bf16.msra.mxu1 %v8743_v31  ;;  %v8765_v31 = vld [vmem:[%s10751_s1 + $0x1118] sm:$0xff] }
 0x20c   :  { %5756 = vmatpush.bf16.msra.mxu2 %v8751_v32  ;;  %v8773_v32 = vld [vmem:[%s10751_s1 + $0x1158] sm:$0xff] }
 0x20d   :  { %5769 = vmatpush.bf16.msra.mxu3 %v8759_v33  ;;  %v8781_v33 = vld [vmem:[%s10751_s1 + $0x1198] sm:$0xff] }
 0x20e   :  { %5731 = vmatpush.bf16.msra.mxu0 %v8734_v36  ;;  %v5505_v61 = vpop.f32.mrf.mxu2 }
 0x20f   :  { %5744 = vmatpush.bf16.msra.mxu1 %v8742_v37  ;;  %v5518_v62 = vpop.f32.mrf.mxu3 }
 0x210   :  { %5757 = vmatpush.bf16.msra.mxu2 %v8750_v39 }
 0x211   :  { %5770 = vmatpush.bf16.msra.mxu3 %v8758_v40  ;;  %v8764_v40 = vld [vmem:[%s10751_s1 + $0x1110] sm:$0xff] }
 0x212   :  { %5732 = vmatpush.bf16.msra.mxu0 %v8733_v42 }
 0x213   :  { %5745 = vmatpush.bf16.msra.mxu1 %v8741_v43  ;;  %v8780_v43 = vld [vmem:[%s10751_s1 + $0x1190] sm:$0xff] }
 0x214   :  { %5758 = vmatpush.bf16.msra.mxu2 %v8749_v44  ;;  %v8788_v44 = vld [vmem:[%s10751_s1 + $0x11d0] sm:$0xff] }
 0x215   :  { %5771 = vmatpush.bf16.msra.mxu3 %v8757_v45  ;;  %v8763_v45 = vld [vmem:[%s10751_s1 + $0x1108] sm:$0xff] }
 0x216   :  { %5733 = vmatpush.bf16.msra.mxu0 %v8732_v51 }
 0x217   :  { %5746 = vmatpush.bf16.msra.mxu1 %v8740_v52  ;;  %v8770_v52 = vld [vmem:[%s10751_s1 + $0x1140] sm:$0xff] }
 0x218   :  { %5759 = vmatpush.bf16.msra.mxu2 %v8748_v54  ;;  %v8786_v54 = vld [vmem:[%s10751_s1 + $0x11c0] sm:$0xff] }
 0x219   :  { %5772 = vmatpush.bf16.msra.mxu3 %v8756_v55  ;;  %v138_v55 = vld.sshfl [vmem:[#allocation1 + $0x20] sm:$0xff pattern:$0x73625140] }
 0x21a   :  { %5734 = vmatpush.bf16.msra.mxu0 %v8731_v57  ;;  %v140_v57 = vld.sshfl [vmem:[#allocation1 + $0x30] sm:$0xff pattern:$0x73625140] }
 0x21b   :  { %5747 = vmatpush.bf16.msra.mxu1 %v8739_v58  ;;  %v141_v58 = vld.sshfl [vmem:[#allocation1 + $0x38] sm:$0xff pattern:$0x73625140]  ;;  %v284_v61 = vpack.c.bf16 %v140_v57, %v140_v57 }
 0x21c   :  { %5760 = vmatpush.bf16.msra.mxu2 %v8747_v59  ;;  %v282_v59 = vpack.c.bf16 %v138_v55, %v138_v55  ;;  %v285_v62 = vpack.c.bf16 %v141_v58, %v141_v58 }
 0x21d   :  { %5773 = vmatpush.bf16.msra.mxu3 %v8755_v60  ;;  %v283_v60 = vpack.c.bf16 %v139_v56, %v139_v56 }
 0x21e   :  { %5735 = vmatpush.bf16.msra.mxu0 %v8730_v63  ;;  %v5529_v23 = vpop.f32.mrf.mxu0 }
 0x21f   :  { %5748 = vmatpush.bf16.msra.mxu1 %v8738_v0  ;;  %v5530_v24 = vadd.f32 %v5529_v23, %v10576_v50  ;;  %v5542_v27 = vpop.f32.mrf.mxu1  ;;  %v8762_v50 = vld [vmem:[%s10751_s1 + $0x1100] sm:$0xff] }
 0x220   :  { %5761 = vmatpush.bf16.msra.mxu2 %v8746_v1 }
 0x221   :  { %5774 = vmatpush.bf16.msra.mxu3 %v8754_v2  ;;  %5736 = vmatmul.bf16.vlgmr.msra.gmra.mxu0 %v278_v11  ;;  %v5543_v30 = vadd.f32 %v5542_v27, %v5530_v24 }
 0x222   :  { %5780 = vmatpush.bf16.msrb.mxu0 %v8769_v3  ;;  %5749 = vmatmul.bf16.vlgmr.msra.gmra.mxu1 %v279_v13 }
 0x223   :  { %5793 = vmatpush.bf16.msrb.mxu1 %v8777_v4  ;;  %5762 = vmatmul.bf16.vlgmr.msra.gmra.mxu2 %v280_v12 }
 0x224   :  { %5806 = vmatpush.bf16.msrb.mxu2 %v8785_v9  ;;  %5775 = vmatmul.bf16.vlgmr.msra.gmra.mxu3 %v281_v14 }
 0x225   :  { %5819 = vmatpush.bf16.msrb.mxu3 %v8793_v10 }
 0x226   :  { %5781 = vmatpush.bf16.msrb.mxu0 %v8768_v15  ;;  %v5555_v35 = vpop.f32.mrf.mxu2  ;;  %v5531_v38 = vpop.f32.mrf.mxu0 }
 0x227   :  { %5794 = vmatpush.bf16.msrb.mxu1 %v8776_v16  ;;  %v5556_v36 = vadd.f32 %v5555_v35, %v5543_v30  ;;  %v5568_v37 = vpop.f32.mrf.mxu3  ;;  %v5544_v42 = vpop.f32.mrf.mxu1  ;;  %v5839_v30 = vld [vmem:[%s10752_s2 + $0x38] sm:$0xff]  ;;  %v5837_v35 = vld [vmem:[%s10752_s2 + $0x28] sm:$0xff] }
 0x228   :  { %5807 = vmatpush.bf16.msrb.mxu2 %v8784_v17  ;;  %v5835_v38 = vld [vmem:[%s10752_s2 + $0x18] sm:$0xff]  ;;  %v5834_v42 = vld [vmem:[%s10752_s2 + $0x10] sm:$0xff] }
 0x229   :  { %5820 = vmatpush.bf16.msrb.mxu3 %v8792_v18  ;;  %v5569_v39 = vadd.f32 %v5568_v37, %v5556_v36  ;;  %v5836_v37 = vld [vmem:[%s10752_s2 + $0x20] sm:$0xff] }
 0x22a   :  { %5782 = vmatpush.bf16.msrb.mxu0 %v8767_v19 }
 0x22b   :  { %5795 = vmatpush.bf16.msrb.mxu1 %v8775_v20 }
 0x22c   :  { %5808 = vmatpush.bf16.msrb.mxu2 %v8783_v21 }
 0x22d   :  { %5821 = vmatpush.bf16.msrb.mxu3 %v8791_v22 }
 0x22e   :  { %5783 = vmatpush.bf16.msrb.mxu0 %v8766_v25  ;;  %v5557_v49 = vpop.f32.mrf.mxu2 }
 0x22f   :  { %5796 = vmatpush.bf16.msrb.mxu1 %v8774_v26  ;;  %v5570_v51 = vpop.f32.mrf.mxu3 }
 0x230   :  { %5809 = vmatpush.bf16.msrb.mxu2 %v8782_v28 }
 0x231   :  { %5822 = vmatpush.bf16.msrb.mxu3 %v8790_v29  ;;  %v5840_v29 = vld [vmem:[%s10752_s2 + $0x40] sm:$0xff] }
 0x232   :  { %5784 = vmatpush.bf16.msrb.mxu0 %v8765_v31 }
 0x233   :  { %5797 = vmatpush.bf16.msrb.mxu1 %v8773_v32 }
 0x234   :  { %5810 = vmatpush.bf16.msrb.mxu2 %v8781_v33  ;;  %v5838_v33 = vld [vmem:[%s10752_s2 + $0x30] sm:$0xff] }
 0x235   :  { %5823 = vmatpush.bf16.msrb.mxu3 %v8789_v34 }
 0x236   :  { %5785 = vmatpush.bf16.msrb.mxu0 %v8764_v40 }
 0x237   :  { %5798 = vmatpush.bf16.msrb.mxu1 %v8772_v41 }
 0x238   :  { %5811 = vmatpush.bf16.msrb.mxu2 %v8780_v43 }
 0x239   :  { %5824 = vmatpush.bf16.msrb.mxu3 %v8788_v44 }
 0x23a   :  { %5786 = vmatpush.bf16.msrb.mxu0 %v8763_v45  ;;  %v5833_v45 = vld [vmem:[%s10752_s2 + $0x8] sm:$0xff] }
 0x23b   :  { %5799 = vmatpush.bf16.msrb.mxu1 %v8771_v46 }
 0x23c   :  { %5812 = vmatpush.bf16.msrb.mxu2 %v8779_v47  ;;  %v5868_v47 = vld [vmem:[%s10752_s2 + $0x50] sm:$0xff] }
 0x23d   :  { %5825 = vmatpush.bf16.msrb.mxu3 %v8787_v48 }
 0x23e   :  { %5787 = vmatpush.bf16.msrb.mxu0 %v8762_v50  ;;  %v5581_v63 = vpop.f32.mrf.mxu0 }
 0x23f   :  { %5800 = vmatpush.bf16.msrb.mxu1 %v8770_v52  ;;  %v5582_v0 = vadd.f32 %v5581_v63, %v5569_v39  ;;  %v5594_v1 = vpop.f32.mrf.mxu1 }
 0x240   :  { %5813 = vmatpush.bf16.msrb.mxu2 %v8778_v53 }
 0x241   :  { %5826 = vmatpush.bf16.msrb.mxu3 %v8786_v54  ;;  %5788 = vmatmul.bf16.vlgmr.msrb.gmra.mxu0 %v282_v59  ;;  %v5595_v2 = vadd.f32 %v5594_v1, %v5582_v0 }
 0x242   :  { %5801 = vmatmul.bf16.vlgmr.msrb.gmra.mxu1 %v283_v60  ;;  %5855 = vmatpush.msra.mxu0 %v5840_v29 }
 0x243   :  { %5814 = vmatmul.bf16.vlgmr.msrb.gmra.mxu2 %v284_v61  ;;  %5890 = vmatpush.msra.mxu1 %v5868_v47 }
 0x244   :  { %5827 = vmatmul.bf16.vlgmr.msrb.gmra.mxu3 %v285_v62  ;;  %5856 = vmatpush.msra.mxu0 %v5839_v30 }
 0x246   :  { %v5607_v3 = vpop.f32.mrf.mxu2  ;;  %v5583_v6 = vpop.f32.mrf.mxu0  ;;  %5857 = vmatpush.msra.mxu0 %v5838_v33 }
 0x247   :  { %v5608_v4 = vadd.f32 %v5607_v3, %v5595_v2  ;;  %v5620_v5 = vpop.f32.mrf.mxu3  ;;  %v5596_v8 = vpop.f32.mrf.mxu1 }
 0x248   :  { %5858 = vmatpush.msra.mxu0 %v5837_v35 }
 0x249   :  { %v5621_v7 = vadd.f32 %v5620_v5, %v5608_v4  ;;  %v8796_v5 = vld [vmem:[%s10752_s2 + $0x48] ss:$0 sm:$0xff] }
 0x24a   :  { %5859 = vmatpush.msra.mxu0 %v5836_v37 }
 0x24c   :  { %5860 = vmatpush.msra.mxu0 %v5835_v38 }
 0x24e   :  { %v5609_v9 = vpop.f32.mrf.mxu2  ;;  %5861 = vmatpush.msra.mxu0 %v5834_v42 }
 0x24f   :  { %v5622_v10 = vpop.f32.mrf.mxu3  ;;  %v8797_v9 = vld [vmem:[%s10752_s2 + $0x58] ss:$0 sm:$0xff] }
 0x250   :  { %5862 = vmatpush.msra.mxu0 %v5833_v45 }
 0x25e   :  { %v5633_v11 = vpop.f32.mrf.mxu0 }
 0x25f   :  { %v5634_v12 = vadd.f32 %v5633_v11, %v5621_v7  ;;  %v5646_v13 = vpop.f32.mrf.mxu1 }
 0x261   :  { %v5647_v14 = vadd.f32 %v5646_v13, %v5634_v12 }
 0x266   :  { %v5659_v15 = vpop.f32.mrf.mxu2  ;;  %v5635_v18 = vpop.f32.mrf.mxu0 }
 0x267   :  { %v5660_v16 = vadd.f32 %v5659_v15, %v5647_v14  ;;  %v5672_v17 = vpop.f32.mrf.mxu3  ;;  %v5648_v20 = vpop.f32.mrf.mxu1 }
 0x269   :  { %v5673_v19 = vadd.f32 %v5672_v17, %v5660_v16 }
 0x26e   :  { %v5661_v21 = vpop.f32.mrf.mxu2 }
 0x26f   :  { %v5674_v22 = vpop.f32.mrf.mxu3 }
 0x27e   :  { %v5685_v23 = vpop.f32.mrf.mxu0 }
 0x27f   :  { %v5698_v24 = vpop.f32.mrf.mxu1  ;;  %v5686_v40 = vadd.f32 %v5685_v23, %v5673_v19 }
 0x281   :  { %v5699_v46 = vadd.f32 %v5698_v24, %v5686_v40 }
 0x286   :  { %v5711_v25 = vpop.f32.mrf.mxu2  ;;  %v5687_v27 = vpop.f32.mrf.mxu0 }
 0x287   :  { %v5724_v26 = vpop.f32.mrf.mxu3  ;;  %v5700_v28 = vpop.f32.mrf.mxu1  ;;  %v5712_v48 = vadd.f32 %v5711_v25, %v5699_v46 }
 0x289   :  { %v5725_v51 = vadd.f32 %v5724_v26, %v5712_v48 }
 0x28e   :  { %v5713_v31 = vpop.f32.mrf.mxu2 }
 0x28f   :  { %v5726_v32 = vpop.f32.mrf.mxu3 }
 0x29e   :  { %v5737_v34 = vpop.f32.mrf.mxu0 }
 0x29f   :  { %v5750_v36 = vpop.f32.mrf.mxu1  ;;  %v5738_v52 = vadd.f32 %v5737_v34, %v5725_v51 }
 0x2a1   :  { %v5751_v53 = vadd.f32 %v5750_v36, %v5738_v52 }
 0x2a6   :  { %v5763_v39 = vpop.f32.mrf.mxu2  ;;  %v5739_v43 = vpop.f32.mrf.mxu0 }
 0x2a7   :  { %v5776_v41 = vpop.f32.mrf.mxu3  ;;  %v5752_v44 = vpop.f32.mrf.mxu1  ;;  %v5764_v54 = vadd.f32 %v5763_v39, %v5751_v53 }
 0x2a9   :  { %v5777_v55 = vadd.f32 %v5776_v41, %v5764_v54 }
 0x2ae   :  { %v5765_v49 = vpop.f32.mrf.mxu2 }
 0x2af   :  { %v5778_v50 = vpop.f32.mrf.mxu3 }
 0x2be   :  { %v5789_v56 = vpop.f32.mrf.mxu0 }
 0x2bf   :  { %v5802_v57 = vpop.f32.mrf.mxu1  ;;  %v5790_v58 = vadd.f32 %v5789_v56, %v5777_v55 }
 0x2c1   :  { %v5803_v59 = vadd.f32 %v5802_v57, %v5790_v58 }
 0x2c6   :  { %v5815_v60 = vpop.f32.mrf.mxu2  ;;  %v5791_v63 = vpop.f32.mrf.mxu0 }
 0x2c7   :  { %v5828_v61 = vpop.f32.mrf.mxu3  ;;  %v5816_v62 = vadd.f32 %v5815_v60, %v5803_v59  ;;  %v5804_v0 = vpop.f32.mrf.mxu1 }
 0x2c9   :  { %v5829_v1 = vadd.f32 %v5828_v61, %v5816_v62 }
 0x2cb   :  { %v5832_v2 = vmax.f32 %v5829_v1, 0.0 }
 0x2cd   :  { %8216 = vmatmul.msk.f32.vlgmr.msra.gmra.mxu0 %vm5843_vm0, %v5832_v2 }
 0x2ce   :  { %v5817_v3 = vpop.f32.mrf.mxu2 }
 0x2cf   :  { %v5830_v4 = vpop.f32.mrf.mxu3 }
 0x34a   :  { %v5864_v6 = vpop.f32.mrf.mxu0 }
 0x34b   :  { %v5865_v7 = vadd.f32 %v8796_v5, %v5864_v6 }
 0x34d   :  { %v5867_v8 = vmax.f32 %v5865_v7, 0.0 }
 0x34f   :  { %8217 = vmatmul.msk.f32.vlgmr.msra.gmra.mxu1 %vm5871_vm1, %v5867_v8 }
 0x3cc   :  { %v5892_v10 = vpop.f32.mrf.mxu1 }
 0x3cd   :  { %v5893_v11 = vadd.f32 %v8797_v9, %v5892_v10 }
 0x3cf   :  { %5895 = vst [vmem:[#allocation2] sm:$0x3] %v5893_v11 }
 0x3d0   :  { %5906 = dma.vmem_to_hbm [thread:$0]  %s5902_s5, 32, %s5904_s8, [#allocation3]  }
 0x3d1   :  { %8822 = dma.done.wait [#allocation3], 32  }
 0x3d2   :  { %8823 = vsyncadd [#allocation3], 4294967264 }
 0x3d3   :  { %5911 = vsyncpa [#allocation3], 1 }

</bundles_post_ra>
